<compile_context>
chip_gen: v6e
topology: v6e:2x2x1
jax: 0.10.0
libtpu: 0.0.40
codegen_flags: <defaults>
</compile_context>

<pallas_src>
import math

import jax
import jax.numpy as jnp
from jax.experimental import pallas as pl
from jax.experimental.pallas import tpu as pltpu

# Deterministic synthetic color matrices (positive entries => valid chromaticity).
SOURCE_MATRIX = (
    (0.4124, 0.3576, 0.1805, 0.0800),
    (0.2126, 0.7152, 0.0722, 0.0400),
    (0.0193, 0.1192, 0.9505, 0.2000),
)
DISPLAY_MATRIX = (
    (0.4866, 0.2657, 0.1982, 0.0500, 0.0300),
    (0.2290, 0.6917, 0.0793, 0.0250, 0.0150),
    (0.0100, 0.0451, 1.0439, 0.1000, 0.0600),
)

_DEG = 180.0 / math.pi
_RAD = math.pi / 180.0
_P25_7 = 25.0 ** 7
_DELTA = 6.0 / 29.0
_DELTA3 = _DELTA ** 3
_FY = (1.0 / 100.0) ** (1.0 / 3.0)       # f(Y/Yn) with Y = 1 (compile-time constant)
_COS30, _SIN30 = math.cos(30.0 * _RAD), math.sin(30.0 * _RAD)
_COS6, _SIN6 = math.cos(6.0 * _RAD), math.sin(6.0 * _RAD)
_COS63, _SIN63 = math.cos(63.0 * _RAD), math.sin(63.0 * _RAD)

_LANES = 128
_SUBLANES = 8
_MAX_TILE_ROWS = 2048     # portable cap (v5e 16 MiB scoped VMEM, v7x 64 MiB physical)


def _round_up(a, b):
    return ((a + b - 1) // b) * b


# ------------------------------- kernel-side math ------------------------------


def _recip_newton(x):
    """EUP approximate reciprocal + one Newton-Raphson refinement (VALU)."""
    r = pl.reciprocal(x, approx=True)
    return r * (2.0 - x * r)


def _recip_approx(x):
    """EUP approximate reciprocal (used where the result is sqrt'd & small-scaled)."""
    return pl.reciprocal(x, approx=True)


def _pow7(t):
    """t**7 as explicit repeated squaring (4 VALU muls, no pow/exp/log)."""
    t2 = t * t
    t4 = t2 * t2
    return t4 * t2 * t


def _k_lab_f(t):
    cube_root = jnp.exp(jnp.log(jnp.maximum(t, 1e-12)) * (1.0 / 3.0))
    return jnp.where(t > _DELTA3, cube_root,
                     t * (1.0 / (3.0 * _DELTA * _DELTA)) + 4.0 / 29.0)


def _k_xy_to_ab(x, y):
    """(a, b) Lab channels; L is a constant (Y = 1) and is not needed."""
    inv_y = _recip_newton(y)             # feeds the cube root -> keep refinement
    X = x * inv_y
    Z = (1.0 - x - y) * inv_y
    fX = _k_lab_f(X * (1.0 / 95.047))
    fZ = _k_lab_f(Z * (1.0 / 108.883))
    a = 500.0 * (fX - _FY)
    b = 200.0 * (_FY - fZ)
    return a, b


def _k_h_prime(a_p, b):
    # atan2 in (-180, 180]; +360 when negative == mod 360 on that range.
    h = jnp.arctan2(b, a_p) * _DEG
    return jnp.where(h < 0.0, h + 360.0, h)


def _k_delta_e2000_ab(a1, b1, a2, b2):
    """CIEDE2000 with L1 == L2 (Y = 1 for both inputs) constant-folded away."""
    C1_ab = jnp.sqrt(a1 * a1 + b1 * b1)
    C2_ab = jnp.sqrt(a2 * a2 + b2 * b2)
    C_ab_mean = (C1_ab + C2_ab) * 0.5
    Cm7 = _pow7(C_ab_mean)
    G = 0.5 * (1.0 - jnp.sqrt(Cm7 * _recip_approx(Cm7 + (_P25_7 + 1e-10))))
    a1p = (1.0 + G) * a1
    a2p = (1.0 + G) * a2
    C1p = jnp.sqrt(a1p * a1p + b1 * b1)
    C2p = jnp.sqrt(a2p * a2p + b2 * b2)
    Cpm = (C1p + C2p) * 0.5

    h1p = _k_h_prime(a1p, b1)
    h2p = _k_h_prime(a2p, b2)
    diff = h1p - h2p
    # Arithmetic wraparound; equivalent to the reference's 3-way select chain.
    dhp = (h2p - h1p) + 360.0 * (jnp.where(diff > 180.0, 1.0, 0.0)
                                 - jnp.where(diff < -180.0, 1.0, 0.0))

    dCp = C2p - C1p
    dHp = 2.0 * jnp.sqrt(C1p * C2p) * jnp.sin(dhp * (_RAD * 0.5))

    hsum = h1p + h2p
    needs_wrap = jnp.abs(diff) > 180.0
    hpm = hsum * 0.5 + jnp.where(needs_wrap,
                                 jnp.where(hsum < 360.0, 180.0, -180.0), 0.0)

    # One sin/cos pair; the four T cosines come from angle-addition (VALU only).
    theta = hpm * _RAD
    c1 = jnp.cos(theta)
    s1 = jnp.sin(theta)
    c2 = 2.0 * c1 * c1 - 1.0            # cos 2θ
    s2 = 2.0 * s1 * c1                  # sin 2θ
    c3 = c1 * (4.0 * c1 * c1 - 3.0)     # cos 3θ
    s3 = s1 * (3.0 - 4.0 * s1 * s1)     # sin 3θ
    c4 = 2.0 * c2 * c2 - 1.0            # cos 4θ
    s4 = 2.0 * s2 * c2                  # sin 4θ
    T = (1.0
         - 0.17 * (c1 * _COS30 + s1 * _SIN30)     # cos(θ - 30°)
         + 0.24 * c2                              # cos(2θ)
         + 0.32 * (c3 * _COS6 - s3 * _SIN6)       # cos(3θ + 6°)
         - 0.20 * (c4 * _COS63 + s4 * _SIN63))    # cos(4θ - 63°)

    dtheta = 30.0 * jnp.exp(-(((hpm - 275.0) * (1.0 / 25.0)) ** 2))
    Cpm7 = _pow7(Cpm)
    RC = 2.0 * jnp.sqrt(Cpm7 * _recip_approx(Cpm7 + (_P25_7 + 1e-10)))
    RT = -RC * jnp.sin((2.0 * _RAD) * dtheta)

    rC = dCp * _recip_newton(1.0 + 0.045 * Cpm)
    rH = dHp * _recip_newton(1.0 + 0.015 * Cpm * T)
    # (dLp/SL)^2 term is identically zero (dLp == 0) and dropped.
    # rC^2 + rH^2 >= |RT*rC*rH| since |RT| <= 2, so the sqrt argument is >= 0.
    return jnp.sqrt(rC * rC + rH * rH + RT * rC * rH)


# --------------------------------- Pallas kernel --------------------------------


def _chromatic_loss_kernel(xy_ref, acc_ref):
    """xy_ref: (4, tile_r, 128) = [sx, sy, ox, oy]; acc_ref: (1, 2, 8, 128)."""
    step = pl.program_id(1)

    @pl.when(step == 0)
    def _init():
        acc_ref[...] = jnp.zeros_like(acc_ref)

    sx = xy_ref[0]
    sy = xy_ref[1]
    ox = xy_ref[2]
    oy = xy_ref[3]

    sa, sb = _k_xy_to_ab(sx, sy)
    oa, ob = _k_xy_to_ab(ox, oy)
    dE = _k_delta_e2000_ab(sa, sb, oa, ob)

    dx = sx - ox
    dy = sy - oy
    mse = dx * dx + dy * dy

    # Tree-reduce along the sublane-group axis down to a single vreg (8, 128):
    # all VALU adds, keeps the resident accumulator block at 2 vregs total.
    tile_r = sx.shape[0]
    groups = tile_r // _SUBLANES
    mse_v = jnp.sum(mse.reshape(groups, _SUBLANES, _LANES), axis=0)
    de_v = jnp.sum(dE.reshape(groups, _SUBLANES, _LANES), axis=0)

    acc_ref[0, 0] = acc_ref[0, 0] + mse_v
    acc_ref[0, 1] = acc_ref[0, 1] + de_v


def chromatic_loss(source, output, alpha=0.6, beta=0.4, tile_rows=1024):
    """source: (..., 4), output: (..., 5); returns scalar f32 loss."""
    src = source.reshape(-1, source.shape[-1]).astype(jnp.float32)   # (N, 4)
    out = output.reshape(-1, output.shape[-1]).astype(jnp.float32)   # (N, 5)
    n = src.shape[0]

    # Channel mixing + chromaticity in XLA (tiny matmul); kernel input shrinks
    # to 16 B/pixel in one lane-dense slab.
    sm = jnp.asarray(SOURCE_MATRIX, jnp.float32)
    dm = jnp.asarray(DISPLAY_MATRIX, jnp.float32)
    s_xyz = src @ sm.T                                    # (N, 3)
    o_xyz = out @ dm.T                                    # (N, 3)
    s_xy = s_xyz[:, :2] / (jnp.sum(s_xyz, axis=-1, keepdims=True) + 1e-8)
    o_xy = o_xyz[:, :2] / (jnp.sum(o_xyz, axis=-1, keepdims=True) + 1e-8)

    # Lane-dense layout: pad N to whole (tile_r, 128) tiles, balanced over cores.
    rows = -(-n // _LANES)
    tile_r = max(_SUBLANES,
                 min(int(tile_rows), _MAX_TILE_ROWS, _round_up(rows, _SUBLANES)))
    tile_r = _round_up(tile_r, _SUBLANES)

    blocks = -(-rows // tile_r)
    num_cores = 2 if blocks >= 2 else 1     # v7x: split row blocks over both TCs
    blocks = _round_up(blocks, num_cores)
    steps_per_core = blocks // num_cores
    rows_pad = blocks * tile_r
    n_pad = rows_pad * _LANES

    def prep(v):
        # Pad with the safe chromaticity 1/3 (identical on both sides ->
        # padded pixels contribute exactly 0 to both sums).
        v = jnp.pad(v, (0, n_pad - n), constant_values=1.0 / 3.0)
        return v.reshape(rows_pad, _LANES)

    stacked = jnp.stack([prep(s_xy[:, 0]), prep(s_xy[:, 1]),
                         prep(o_xy[:, 0]), prep(o_xy[:, 1])], axis=0)  # (4, rows, 128)

    grid = (num_cores, steps_per_core)
    in_spec = pl.BlockSpec((4, tile_r, _LANES),
                           lambda c, i: (0, c * steps_per_core + i, 0))
    out_spec = pl.BlockSpec((1, 2, _SUBLANES, _LANES), lambda c, i: (c, 0, 0, 0))

    partials = pl.pallas_call(
        _chromatic_loss_kernel,
        out_shape=jax.ShapeDtypeStruct((num_cores, 2, _SUBLANES, _LANES), jnp.float32),
        grid_spec=pltpu.PrefetchScalarGridSpec(
            num_scalar_prefetch=0,
            grid=grid,
            in_specs=[in_spec],
            out_specs=out_spec,
        ),
        compiler_params=pltpu.CompilerParams(
            dimension_semantics=("parallel", "arbitrary"),
            vmem_limit_bytes=48 * 1024 * 1024),
        cost_estimate=pl.CostEstimate(
            flops=140 * n_pad,
            transcendentals=26 * n_pad,
            bytes_accessed=16 * n_pad + num_cores * 2 * _SUBLANES * _LANES * 4),
    )(stacked)

    # Tiny final reduction + alpha/beta combination in the wrapper.
    inv_n = 1.0 / float(n)
    mse_sum = jnp.sum(partials[:, 0])
    de_sum = jnp.sum(partials[:, 1])
    # xyz MSE is a mean over 2N elements -> the extra factor 0.5.
    return alpha * (0.5 * inv_n) * mse_sum + beta * inv_n * de_sum


# ------------------------------ pure-JAX reference ------------------------------
# Straightforward port of the PyTorch module (plain divisions, jnp.mod, all four
# cosines, full dLp/SL term) -- deliberately NOT sharing the kernel's rewrites.


def _ref_lab_f(t):
    return jnp.where(t > _DELTA3,
                     jnp.power(jnp.maximum(t, 1e-12), 1.0 / 3.0),
                     t / (3.0 * _DELTA * _DELTA) + 4.0 / 29.0)


def _ref_xy_to_lab(xy):
    x, y = xy[:, 0], xy[:, 1]
    X = x / y
    Y = jnp.ones_like(x)
    Z = (1.0 - x - y) / y
    fX = _ref_lab_f(X / 95.047)
    fY = _ref_lab_f(Y / 100.0)
    fZ = _ref_lab_f(Z / 108.883)
    return 116.0 * fY - 16.0, 500.0 * (fX - fY), 200.0 * (fY - fZ)


def _ref_h_prime(a_p, b):
    h = jnp.arctan2(b, a_p) * _DEG
    h = jnp.mod(h, 360.0)
    return jnp.where(h < 0.0, h + 360.0, h)


def _ref_delta_e2000(L1, a1, b1, L2, a2, b2):
    C1_ab = jnp.sqrt(a1 * a1 + b1 * b1)
    C2_ab = jnp.sqrt(a2 * a2 + b2 * b2)
    C_ab_mean = (C1_ab + C2_ab) / 2.0
    Cm7 = C_ab_mean ** 7
    G = 0.5 * (1.0 - jnp.sqrt(Cm7 / (Cm7 + _P25_7 + 1e-10)))
    a1p = (1.0 + G) * a1
    a2p = (1.0 + G) * a2
    C1p = jnp.sqrt(a1p * a1p + b1 * b1)
    C2p = jnp.sqrt(a2p * a2p + b2 * b2)
    Cpm = (C1p + C2p) / 2.0

    h1p = _ref_h_prime(a1p, b1)
    h2p = _ref_h_prime(a2p, b2)
    diff = h1p - h2p
    abs_diff = jnp.abs(diff)
    dhp = jnp.where(abs_diff <= 180.0, h2p - h1p,
                    jnp.where(diff > 180.0, h2p - h1p + 360.0,
                              jnp.where(diff < -180.0, h2p - h1p - 360.0, 0.0)))

    dLp = L2 - L1
    dCp = C2p - C1p
    dHp = 2.0 * jnp.sqrt(C1p * C2p) * jnp.sin(dhp * _RAD / 2.0)

    Lpm = (L1 + L2) / 2.0
    hsum = h1p + h2p
    hpm = jnp.where(abs_diff <= 180.0, hsum / 2.0,
                    jnp.where((hsum < 360.0) & (abs_diff > 180.0), (hsum + 360.0) / 2.0,
                              jnp.where((hsum >= 360.0) & (abs_diff > 180.0),
                                        (hsum - 360.0) / 2.0, 0.0)))

    T = (1.0
         - 0.17 * jnp.cos((hpm - 30.0) * _RAD)
         + 0.24 * jnp.cos(2.0 * hpm * _RAD)
         + 0.32 * jnp.cos((3.0 * hpm + 6.0) * _RAD)
         - 0.20 * jnp.cos((4.0 * hpm - 63.0) * _RAD))
    dtheta = 30.0 * jnp.exp(-(((hpm - 275.0) / 25.0) ** 2))
    Cpm7 = Cpm ** 7
    RC = 2.0 * jnp.sqrt(Cpm7 / (Cpm7 + _P25_7 + 1e-10))
    Ld2 = (Lpm - 50.0) ** 2
    SL = 1.0 + 0.015 * Ld2 / (jnp.sqrt(20.0 + Ld2) + 1e-10)
    SC = 1.0 + 0.045 * Cpm
    SH = 1.0 + 0.015 * Cpm * T
    RT = -RC * jnp.sin(2.0 * dtheta * _RAD)

    return jnp.sqrt((dLp / SL) ** 2 + (dCp / SC) ** 2 + (dHp / SH) ** 2
                    + RT * (dCp / SC) * (dHp / SH))


def chromatic_loss_reference(source, output, alpha=0.6, beta=0.4):
    src = source.reshape(-1, source.shape[-1]).astype(jnp.float32)
    out = output.reshape(-1, output.shape[-1]).astype(jnp.float32)
    sm = jnp.asarray(SOURCE_MATRIX, jnp.float32)
    dm = jnp.asarray(DISPLAY_MATRIX, jnp.float32)

    def to_xy(rgb, m):
        xyz = rgb @ m.T
        s = jnp.sum(xyz, axis=-1, keepdims=True)
        return xyz[:, :2] / (s + 1e-8)

    s_xy = to_xy(src, sm)
    o_xy = to_xy(out, dm)
    L1, a1, b1 = _ref_xy_to_lab(s_xy)
    L2, a2, b2 = _ref_xy_to_lab(o_xy)
    xyz_loss = jnp.mean((s_xy - o_xy) ** 2)
    de_loss = jnp.mean(_ref_delta_e2000(L1, a1, b1, L2, a2, b2))
    return alpha * xyz_loss + beta * de_loss


# ----------------------------------- main ---------------------------------------

if __name__ == "__main__":
    key = jax.random.PRNGKey(0)
    k1, k2, k3, k4, k5, k6 = jax.random.split(key, 6)

    def check(name, loss, ref):
        loss_f, ref_f = float(loss), float(ref)
        assert math.isfinite(loss_f), f"{name}: non-finite loss {loss_f}"
        assert abs(loss_f - ref_f) <= 1e-2 + 1e-2 * abs(ref_f), (
            f"{name}: mismatch pallas={loss_f} ref={ref_f}")

    # Case 1: small image-like batch (single block, single core path).
    source = jax.random.uniform(k1, (2, 16, 16, 4), jnp.float32, minval=0.05, maxval=1.0)
    output = jax.random.uniform(k2, (2, 16, 16, 5), jnp.float32, minval=0.05, maxval=1.0)
    loss = jax.block_until_ready(chromatic_loss(source, output))
    ref = jax.block_until_ready(chromatic_loss_reference(source, output))
    check("case1", loss, ref)

    # Case 2: pixel count not a multiple of 128, tiny tile -> exercises padding
    # and the 2-way parallel core axis (one block per core).
    source2 = jax.random.uniform(k3, (1, 9, 130, 4), jnp.float32, minval=0.05, maxval=1.0)
    output2 = jax.random.uniform(k4, (1, 9, 130, 5), jnp.float32, minval=0.05, maxval=1.0)
    loss2 = jax.block_until_ready(chromatic_loss(source2, output2, tile_rows=8))
    ref2 = jax.block_until_ready(chromatic_loss_reference(source2, output2))
    check("case2", loss2, ref2)

    # Case 3: multiple blocks per core -> exercises the accumulating reduction
    # across grid steps plus a fully padded trailing block.
    source3 = jax.random.uniform(k5, (2, 24, 64, 4), jnp.float32, minval=0.05, maxval=1.0)
    output3 = jax.random.uniform(k6, (2, 24, 64, 5), jnp.float32, minval=0.05, maxval=1.0)
    loss3 = jax.block_until_ready(chromatic_loss(source3, output3, tile_rows=8))
    ref3 = jax.block_until_ready(chromatic_loss_reference(source3, output3))
    check("case3", loss3, ref3)

    print("KERNEL_OK")
</pallas_src>

<mosaic_0001>
module attributes {stable_mosaic.version = 11 : i64} {
  func.func @_chromatic_loss_kernel(%arg0: i32, %arg1: i32, %arg2: memref<4x8x128xf32, #tpu.memory_space<vmem>>, %arg3: memref<1x2x8x128xf32, #tpu.memory_space<vmem>>) attributes {dimension_semantics = [#tpu.dimension_semantics<parallel>, #tpu.dimension_semantics<arbitrary>], iteration_bounds = array<i64: 1, 1>, scalar_prefetch = 0 : i64, scratch_operands = 0 : i64, tpu.core_type = #tpu.core_type<tc>, window_params = [{transform_indices = @transform_0, window_bounds = array<i64: 4, 8, 128>}, {transform_indices = @transform_1, window_bounds = array<i64: 1, 2, 8, 128>}]} {
    %c0_i32 = arith.constant 0 : i32
    %0 = arith.cmpi eq, %arg1, %c0_i32 : i32
    %1 = arith.extui %0 : i1 to i32
    %c0_i32_0 = arith.constant 0 : i32
    %2 = arith.cmpi ne, %1, %c0_i32_0 : i32
    scf.if %2 {
      %cst_126 = arith.constant 0.000000e+00 : f32
      %339 = vector.broadcast %cst_126 : f32 to vector<1x2x8x128xf32>
      %c0_127 = arith.constant 0 : index
      %c0_128 = arith.constant 0 : index
      %c0_129 = arith.constant 0 : index
      %c0_130 = arith.constant 0 : index
      %340 = vector.load %arg3[%c0_127, %c0_128, %c0_129, %c0_130] : memref<1x2x8x128xf32, #tpu.memory_space<vmem>>, vector<1x2x8x128xf32>
      tpu.vector_store %arg3[%c0_127, %c0_128, %c0_129, %c0_130], %339 {strides = array<i32>} : memref<1x2x8x128xf32, #tpu.memory_space<vmem>>, vector<1x2x8x128xf32>,
    } else {
    }
    %c0 = arith.constant 0 : index
    %c0_1 = arith.constant 0 : index
    %c0_2 = arith.constant 0 : index
    %3 = vector.load %arg2[%c0, %c0_1, %c0_2] : memref<4x8x128xf32, #tpu.memory_space<vmem>>, vector<1x8x128xf32>
    %4 = vector.shape_cast %3 : vector<1x8x128xf32> to vector<8x128xf32>
    %c1 = arith.constant 1 : index
    %c0_3 = arith.constant 0 : index
    %c0_4 = arith.constant 0 : index
    %5 = vector.load %arg2[%c1, %c0_3, %c0_4] : memref<4x8x128xf32, #tpu.memory_space<vmem>>, vector<1x8x128xf32>
    %6 = vector.shape_cast %5 : vector<1x8x128xf32> to vector<8x128xf32>
    %c2 = arith.constant 2 : index
    %c0_5 = arith.constant 0 : index
    %c0_6 = arith.constant 0 : index
    %7 = vector.load %arg2[%c2, %c0_5, %c0_6] : memref<4x8x128xf32, #tpu.memory_space<vmem>>, vector<1x8x128xf32>
    %8 = vector.shape_cast %7 : vector<1x8x128xf32> to vector<8x128xf32>
    %c3 = arith.constant 3 : index
    %c0_7 = arith.constant 0 : index
    %c0_8 = arith.constant 0 : index
    %9 = vector.load %arg2[%c3, %c0_7, %c0_8] : memref<4x8x128xf32, #tpu.memory_space<vmem>>, vector<1x8x128xf32>
    %10 = vector.shape_cast %9 : vector<1x8x128xf32> to vector<8x128xf32>
    %11 = tpu.reciprocal %6 {approx = true} : vector<8x128xf32> -> vector<8x128xf32>
    %12 = arith.mulf %6, %11 : vector<8x128xf32>
    %cst = arith.constant 2.000000e+00 : f32
    %13 = vector.broadcast %cst : f32 to vector<8x128xf32>
    %14 = arith.subf %13, %12 : vector<8x128xf32>
    %15 = arith.mulf %11, %14 : vector<8x128xf32>
    %16 = arith.mulf %4, %15 : vector<8x128xf32>
    %cst_9 = arith.constant 1.000000e+00 : f32
    %17 = vector.broadcast %cst_9 : f32 to vector<8x128xf32>
    %18 = arith.subf %17, %4 : vector<8x128xf32>
    %19 = arith.subf %18, %6 : vector<8x128xf32>
    %20 = arith.mulf %19, %15 : vector<8x128xf32>
    %cst_10 = arith.constant 0.0105211101 : f32
    %21 = vector.broadcast %cst_10 : f32 to vector<8x128xf32>
    %22 = arith.mulf %16, %21 : vector<8x128xf32>
    %cst_11 = arith.constant 9.99999996E-13 : f32
    %23 = vector.broadcast %cst_11 : f32 to vector<8x128xf32>
    %24 = arith.maximumf %22, %23 : vector<8x128xf32>
    %25 = math.log %24 : vector<8x128xf32>
    %cst_12 = arith.constant 0.333333343 : f32
    %26 = vector.broadcast %cst_12 : f32 to vector<8x128xf32>
    %27 = arith.mulf %25, %26 : vector<8x128xf32>
    %28 = math.exp %27 : vector<8x128xf32>
    %cst_13 = arith.constant 0.00885645207 : f32
    %29 = vector.broadcast %cst_13 : f32 to vector<8x128xf32>
    %30 = arith.cmpf ogt, %22, %29 : vector<8x128xf32>
    %cst_14 = arith.constant 7.7870369 : f32
    %31 = vector.broadcast %cst_14 : f32 to vector<8x128xf32>
    %32 = arith.mulf %22, %31 : vector<8x128xf32>
    %cst_15 = arith.constant 0.137931034 : f32
    %33 = vector.broadcast %cst_15 : f32 to vector<8x128xf32>
    %34 = arith.addf %32, %33 : vector<8x128xf32>
    %35 = arith.select %30, %28, %34 : vector<8x128xi1>, vector<8x128xf32>
    %cst_16 = arith.constant 0.00918417051 : f32
    %36 = vector.broadcast %cst_16 : f32 to vector<8x128xf32>
    %37 = arith.mulf %20, %36 : vector<8x128xf32>
    %cst_17 = arith.constant 9.99999996E-13 : f32
    %38 = vector.broadcast %cst_17 : f32 to vector<8x128xf32>
    %39 = arith.maximumf %37, %38 : vector<8x128xf32>
    %40 = math.log %39 : vector<8x128xf32>
    %cst_18 = arith.constant 0.333333343 : f32
    %41 = vector.broadcast %cst_18 : f32 to vector<8x128xf32>
    %42 = arith.mulf %40, %41 : vector<8x128xf32>
    %43 = math.exp %42 : vector<8x128xf32>
    %cst_19 = arith.constant 0.00885645207 : f32
    %44 = vector.broadcast %cst_19 : f32 to vector<8x128xf32>
    %45 = arith.cmpf ogt, %37, %44 : vector<8x128xf32>
    %cst_20 = arith.constant 7.7870369 : f32
    %46 = vector.broadcast %cst_20 : f32 to vector<8x128xf32>
    %47 = arith.mulf %37, %46 : vector<8x128xf32>
    %cst_21 = arith.constant 0.137931034 : f32
    %48 = vector.broadcast %cst_21 : f32 to vector<8x128xf32>
    %49 = arith.addf %47, %48 : vector<8x128xf32>
    %50 = arith.select %45, %43, %49 : vector<8x128xi1>, vector<8x128xf32>
    %cst_22 = arith.constant 0.215443462 : f32
    %51 = vector.broadcast %cst_22 : f32 to vector<8x128xf32>
    %52 = arith.subf %35, %51 : vector<8x128xf32>
    %cst_23 = arith.constant 5.000000e+02 : f32
    %53 = vector.broadcast %cst_23 : f32 to vector<8x128xf32>
    %54 = arith.mulf %53, %52 : vector<8x128xf32>
    %cst_24 = arith.constant 0.215443462 : f32
    %55 = vector.broadcast %cst_24 : f32 to vector<8x128xf32>
    %56 = arith.subf %55, %50 : vector<8x128xf32>
    %cst_25 = arith.constant 2.000000e+02 : f32
    %57 = vector.broadcast %cst_25 : f32 to vector<8x128xf32>
    %58 = arith.mulf %57, %56 : vector<8x128xf32>
    %59 = tpu.reciprocal %10 {approx = true} : vector<8x128xf32> -> vector<8x128xf32>
    %60 = arith.mulf %10, %59 : vector<8x128xf32>
    %cst_26 = arith.constant 2.000000e+00 : f32
    %61 = vector.broadcast %cst_26 : f32 to vector<8x128xf32>
    %62 = arith.subf %61, %60 : vector<8x128xf32>
    %63 = arith.mulf %59, %62 : vector<8x128xf32>
    %64 = arith.mulf %8, %63 : vector<8x128xf32>
    %cst_27 = arith.constant 1.000000e+00 : f32
    %65 = vector.broadcast %cst_27 : f32 to vector<8x128xf32>
    %66 = arith.subf %65, %8 : vector<8x128xf32>
    %67 = arith.subf %66, %10 : vector<8x128xf32>
    %68 = arith.mulf %67, %63 : vector<8x128xf32>
    %cst_28 = arith.constant 0.0105211101 : f32
    %69 = vector.broadcast %cst_28 : f32 to vector<8x128xf32>
    %70 = arith.mulf %64, %69 : vector<8x128xf32>
    %cst_29 = arith.constant 9.99999996E-13 : f32
    %71 = vector.broadcast %cst_29 : f32 to vector<8x128xf32>
    %72 = arith.maximumf %70, %71 : vector<8x128xf32>
    %73 = math.log %72 : vector<8x128xf32>
    %cst_30 = arith.constant 0.333333343 : f32
    %74 = vector.broadcast %cst_30 : f32 to vector<8x128xf32>
    %75 = arith.mulf %73, %74 : vector<8x128xf32>
    %76 = math.exp %75 : vector<8x128xf32>
    %cst_31 = arith.constant 0.00885645207 : f32
    %77 = vector.broadcast %cst_31 : f32 to vector<8x128xf32>
    %78 = arith.cmpf ogt, %70, %77 : vector<8x128xf32>
    %cst_32 = arith.constant 7.7870369 : f32
    %79 = vector.broadcast %cst_32 : f32 to vector<8x128xf32>
    %80 = arith.mulf %70, %79 : vector<8x128xf32>
    %cst_33 = arith.constant 0.137931034 : f32
    %81 = vector.broadcast %cst_33 : f32 to vector<8x128xf32>
    %82 = arith.addf %80, %81 : vector<8x128xf32>
    %83 = arith.select %78, %76, %82 : vector<8x128xi1>, vector<8x128xf32>
    %cst_34 = arith.constant 0.00918417051 : f32
    %84 = vector.broadcast %cst_34 : f32 to vector<8x128xf32>
    %85 = arith.mulf %68, %84 : vector<8x128xf32>
    %cst_35 = arith.constant 9.99999996E-13 : f32
    %86 = vector.broadcast %cst_35 : f32 to vector<8x128xf32>
    %87 = arith.maximumf %85, %86 : vector<8x128xf32>
    %88 = math.log %87 : vector<8x128xf32>
    %cst_36 = arith.constant 0.333333343 : f32
    %89 = vector.broadcast %cst_36 : f32 to vector<8x128xf32>
    %90 = arith.mulf %88, %89 : vector<8x128xf32>
    %91 = math.exp %90 : vector<8x128xf32>
    %cst_37 = arith.constant 0.00885645207 : f32
    %92 = vector.broadcast %cst_37 : f32 to vector<8x128xf32>
    %93 = arith.cmpf ogt, %85, %92 : vector<8x128xf32>
    %cst_38 = arith.constant 7.7870369 : f32
    %94 = vector.broadcast %cst_38 : f32 to vector<8x128xf32>
    %95 = arith.mulf %85, %94 : vector<8x128xf32>
    %cst_39 = arith.constant 0.137931034 : f32
    %96 = vector.broadcast %cst_39 : f32 to vector<8x128xf32>
    %97 = arith.addf %95, %96 : vector<8x128xf32>
    %98 = arith.select %93, %91, %97 : vector<8x128xi1>, vector<8x128xf32>
    %cst_40 = arith.constant 0.215443462 : f32
    %99 = vector.broadcast %cst_40 : f32 to vector<8x128xf32>
    %100 = arith.subf %83, %99 : vector<8x128xf32>
    %cst_41 = arith.constant 5.000000e+02 : f32
    %101 = vector.broadcast %cst_41 : f32 to vector<8x128xf32>
    %102 = arith.mulf %101, %100 : vector<8x128xf32>
    %cst_42 = arith.constant 0.215443462 : f32
    %103 = vector.broadcast %cst_42 : f32 to vector<8x128xf32>
    %104 = arith.subf %103, %98 : vector<8x128xf32>
    %cst_43 = arith.constant 2.000000e+02 : f32
    %105 = vector.broadcast %cst_43 : f32 to vector<8x128xf32>
    %106 = arith.mulf %105, %104 : vector<8x128xf32>
    %107 = arith.mulf %54, %54 : vector<8x128xf32>
    %108 = arith.mulf %58, %58 : vector<8x128xf32>
    %109 = arith.addf %107, %108 : vector<8x128xf32>
    %110 = math.sqrt %109 : vector<8x128xf32>
    %111 = arith.mulf %102, %102 : vector<8x128xf32>
    %112 = arith.mulf %106, %106 : vector<8x128xf32>
    %113 = arith.addf %111, %112 : vector<8x128xf32>
    %114 = math.sqrt %113 : vector<8x128xf32>
    %115 = arith.addf %110, %114 : vector<8x128xf32>
    %cst_44 = arith.constant 5.000000e-01 : f32
    %116 = vector.broadcast %cst_44 : f32 to vector<8x128xf32>
    %117 = arith.mulf %115, %116 : vector<8x128xf32>
    %118 = arith.mulf %117, %117 : vector<8x128xf32>
    %119 = arith.mulf %118, %118 : vector<8x128xf32>
    %120 = arith.mulf %119, %118 : vector<8x128xf32>
    %121 = arith.mulf %120, %117 : vector<8x128xf32>
    %cst_45 = arith.constant 6.10351565E+9 : f32
    %122 = vector.broadcast %cst_45 : f32 to vector<8x128xf32>
    %123 = arith.addf %121, %122 : vector<8x128xf32>
    %124 = tpu.reciprocal %123 {approx = true} : vector<8x128xf32> -> vector<8x128xf32>
    %125 = arith.mulf %121, %124 : vector<8x128xf32>
    %126 = math.sqrt %125 : vector<8x128xf32>
    %cst_46 = arith.constant 1.000000e+00 : f32
    %127 = vector.broadcast %cst_46 : f32 to vector<8x128xf32>
    %128 = arith.subf %127, %126 : vector<8x128xf32>
    %cst_47 = arith.constant 5.000000e-01 : f32
    %129 = vector.broadcast %cst_47 : f32 to vector<8x128xf32>
    %130 = arith.mulf %129, %128 : vector<8x128xf32>
    %cst_48 = arith.constant 1.000000e+00 : f32
    %131 = vector.broadcast %cst_48 : f32 to vector<8x128xf32>
    %132 = arith.addf %131, %130 : vector<8x128xf32>
    %133 = arith.mulf %132, %54 : vector<8x128xf32>
    %cst_49 = arith.constant 1.000000e+00 : f32
    %134 = vector.broadcast %cst_49 : f32 to vector<8x128xf32>
    %135 = arith.addf %134, %130 : vector<8x128xf32>
    %136 = arith.mulf %135, %102 : vector<8x128xf32>
    %137 = arith.mulf %133, %133 : vector<8x128xf32>
    %138 = arith.mulf %58, %58 : vector<8x128xf32>
    %139 = arith.addf %137, %138 : vector<8x128xf32>
    %140 = math.sqrt %139 : vector<8x128xf32>
    %141 = arith.mulf %136, %136 : vector<8x128xf32>
    %142 = arith.mulf %106, %106 : vector<8x128xf32>
    %143 = arith.addf %141, %142 : vector<8x128xf32>
    %144 = math.sqrt %143 : vector<8x128xf32>
    %145 = arith.addf %140, %144 : vector<8x128xf32>
    %cst_50 = arith.constant 5.000000e-01 : f32
    %146 = vector.broadcast %cst_50 : f32 to vector<8x128xf32>
    %147 = arith.mulf %145, %146 : vector<8x128xf32>
    %148 = math.atan2 %58, %133 : vector<8x128xf32>
    %cst_51 = arith.constant 57.2957802 : f32
    %149 = vector.broadcast %cst_51 : f32 to vector<8x128xf32>
    %150 = arith.mulf %148, %149 : vector<8x128xf32>
    %cst_52 = arith.constant 0.000000e+00 : f32
    %151 = vector.broadcast %cst_52 : f32 to vector<8x128xf32>
    %152 = arith.cmpf olt, %150, %151 : vector<8x128xf32>
    %cst_53 = arith.constant 3.600000e+02 : f32
    %153 = vector.broadcast %cst_53 : f32 to vector<8x128xf32>
    %154 = arith.addf %150, %153 : vector<8x128xf32>
    %155 = arith.select %152, %154, %150 : vector<8x128xi1>, vector<8x128xf32>
    %156 = math.atan2 %106, %136 : vector<8x128xf32>
    %cst_54 = arith.constant 57.2957802 : f32
    %157 = vector.broadcast %cst_54 : f32 to vector<8x128xf32>
    %158 = arith.mulf %156, %157 : vector<8x128xf32>
    %cst_55 = arith.constant 0.000000e+00 : f32
    %159 = vector.broadcast %cst_55 : f32 to vector<8x128xf32>
    %160 = arith.cmpf olt, %158, %159 : vector<8x128xf32>
    %cst_56 = arith.constant 3.600000e+02 : f32
    %161 = vector.broadcast %cst_56 : f32 to vector<8x128xf32>
    %162 = arith.addf %158, %161 : vector<8x128xf32>
    %163 = arith.select %160, %162, %158 : vector<8x128xi1>, vector<8x128xf32>
    %164 = arith.subf %155, %163 : vector<8x128xf32>
    %165 = arith.subf %163, %155 : vector<8x128xf32>
    %cst_57 = arith.constant 1.800000e+02 : f32
    %166 = vector.broadcast %cst_57 : f32 to vector<8x128xf32>
    %167 = arith.cmpf ogt, %164, %166 : vector<8x128xf32>
    %cst_58 = arith.constant 1.000000e+00 : f32
    %cst_59 = arith.constant 0.000000e+00 : f32
    %168 = vector.broadcast %cst_58 : f32 to vector<8x128xf32>
    %169 = vector.broadcast %cst_59 : f32 to vector<8x128xf32>
    %170 = arith.select %167, %168, %169 : vector<8x128xi1>, vector<8x128xf32>
    %cst_60 = arith.constant -1.800000e+02 : f32
    %171 = vector.broadcast %cst_60 : f32 to vector<8x128xf32>
    %172 = arith.cmpf olt, %164, %171 : vector<8x128xf32>
    %cst_61 = arith.constant 1.000000e+00 : f32
    %cst_62 = arith.constant 0.000000e+00 : f32
    %173 = vector.broadcast %cst_61 : f32 to vector<8x128xf32>
    %174 = vector.broadcast %cst_62 : f32 to vector<8x128xf32>
    %175 = arith.select %172, %173, %174 : vector<8x128xi1>, vector<8x128xf32>
    %176 = arith.subf %170, %175 : vector<8x128xf32>
    %cst_63 = arith.constant 3.600000e+02 : f32
    %177 = vector.broadcast %cst_63 : f32 to vector<8x128xf32>
    %178 = arith.mulf %177, %176 : vector<8x128xf32>
    %179 = arith.addf %165, %178 : vector<8x128xf32>
    %180 = arith.subf %144, %140 : vector<8x128xf32>
    %181 = arith.mulf %140, %144 : vector<8x128xf32>
    %182 = math.sqrt %181 : vector<8x128xf32>
    %cst_64 = arith.constant 2.000000e+00 : f32
    %183 = vector.broadcast %cst_64 : f32 to vector<8x128xf32>
    %184 = arith.mulf %183, %182 : vector<8x128xf32>
    %cst_65 = arith.constant 0.00872664619 : f32
    %185 = vector.broadcast %cst_65 : f32 to vector<8x128xf32>
    %186 = arith.mulf %179, %185 : vector<8x128xf32>
    %187 = math.sin %186 : vector<8x128xf32>
    %188 = arith.mulf %184, %187 : vector<8x128xf32>
    %189 = arith.addf %155, %163 : vector<8x128xf32>
    %190 = math.absf %164 : vector<8x128xf32>
    %cst_66 = arith.constant 1.800000e+02 : f32
    %191 = vector.broadcast %cst_66 : f32 to vector<8x128xf32>
    %192 = arith.cmpf ogt, %190, %191 : vector<8x128xf32>
    %cst_67 = arith.constant 5.000000e-01 : f32
    %193 = vector.broadcast %cst_67 : f32 to vector<8x128xf32>
    %194 = arith.mulf %189, %193 : vector<8x128xf32>
    %cst_68 = arith.constant 3.600000e+02 : f32
    %195 = vector.broadcast %cst_68 : f32 to vector<8x128xf32>
    %196 = arith.cmpf olt, %189, %195 : vector<8x128xf32>
    %cst_69 = arith.constant 1.800000e+02 : f32
    %cst_70 = arith.constant -1.800000e+02 : f32
    %197 = vector.broadcast %cst_69 : f32 to vector<8x128xf32>
    %198 = vector.broadcast %cst_70 : f32 to vector<8x128xf32>
    %199 = arith.select %196, %197, %198 : vector<8x128xi1>, vector<8x128xf32>
    %cst_71 = arith.constant 0.000000e+00 : f32
    %200 = vector.broadcast %cst_71 : f32 to vector<8x128xf32>
    %201 = arith.select %192, %199, %200 : vector<8x128xi1>, vector<8x128xf32>
    %202 = arith.addf %194, %201 : vector<8x128xf32>
    %cst_72 = arith.constant 0.0174532924 : f32
    %203 = vector.broadcast %cst_72 : f32 to vector<8x128xf32>
    %204 = arith.mulf %202, %203 : vector<8x128xf32>
    %205 = math.cos %204 : vector<8x128xf32>
    %206 = math.sin %204 : vector<8x128xf32>
    %cst_73 = arith.constant 2.000000e+00 : f32
    %207 = vector.broadcast %cst_73 : f32 to vector<8x128xf32>
    %208 = arith.mulf %207, %205 : vector<8x128xf32>
    %209 = arith.mulf %208, %205 : vector<8x128xf32>
    %cst_74 = arith.constant 1.000000e+00 : f32
    %210 = vector.broadcast %cst_74 : f32 to vector<8x128xf32>
    %211 = arith.subf %209, %210 : vector<8x128xf32>
    %cst_75 = arith.constant 2.000000e+00 : f32
    %212 = vector.broadcast %cst_75 : f32 to vector<8x128xf32>
    %213 = arith.mulf %212, %206 : vector<8x128xf32>
    %214 = arith.mulf %213, %205 : vector<8x128xf32>
    %cst_76 = arith.constant 4.000000e+00 : f32
    %215 = vector.broadcast %cst_76 : f32 to vector<8x128xf32>
    %216 = arith.mulf %215, %205 : vector<8x128xf32>
    %217 = arith.mulf %216, %205 : vector<8x128xf32>
    %cst_77 = arith.constant 3.000000e+00 : f32
    %218 = vector.broadcast %cst_77 : f32 to vector<8x128xf32>
    %219 = arith.subf %217, %218 : vector<8x128xf32>
    %220 = arith.mulf %205, %219 : vector<8x128xf32>
    %cst_78 = arith.constant 4.000000e+00 : f32
    %221 = vector.broadcast %cst_78 : f32 to vector<8x128xf32>
    %222 = arith.mulf %221, %206 : vector<8x128xf32>
    %223 = arith.mulf %222, %206 : vector<8x128xf32>
    %cst_79 = arith.constant 3.000000e+00 : f32
    %224 = vector.broadcast %cst_79 : f32 to vector<8x128xf32>
    %225 = arith.subf %224, %223 : vector<8x128xf32>
    %226 = arith.mulf %206, %225 : vector<8x128xf32>
    %cst_80 = arith.constant 2.000000e+00 : f32
    %227 = vector.broadcast %cst_80 : f32 to vector<8x128xf32>
    %228 = arith.mulf %227, %211 : vector<8x128xf32>
    %229 = arith.mulf %228, %211 : vector<8x128xf32>
    %cst_81 = arith.constant 1.000000e+00 : f32
    %230 = vector.broadcast %cst_81 : f32 to vector<8x128xf32>
    %231 = arith.subf %229, %230 : vector<8x128xf32>
    %cst_82 = arith.constant 2.000000e+00 : f32
    %232 = vector.broadcast %cst_82 : f32 to vector<8x128xf32>
    %233 = arith.mulf %232, %214 : vector<8x128xf32>
    %234 = arith.mulf %233, %211 : vector<8x128xf32>
    %cst_83 = arith.constant 0.866025388 : f32
    %235 = vector.broadcast %cst_83 : f32 to vector<8x128xf32>
    %236 = arith.mulf %205, %235 : vector<8x128xf32>
    %cst_84 = arith.constant 5.000000e-01 : f32
    %237 = vector.broadcast %cst_84 : f32 to vector<8x128xf32>
    %238 = arith.mulf %206, %237 : vector<8x128xf32>
    %239 = arith.addf %236, %238 : vector<8x128xf32>
    %cst_85 = arith.constant 1.700000e-01 : f32
    %240 = vector.broadcast %cst_85 : f32 to vector<8x128xf32>
    %241 = arith.mulf %240, %239 : vector<8x128xf32>
    %cst_86 = arith.constant 1.000000e+00 : f32
    %242 = vector.broadcast %cst_86 : f32 to vector<8x128xf32>
    %243 = arith.subf %242, %241 : vector<8x128xf32>
    %cst_87 = arith.constant 2.400000e-01 : f32
    %244 = vector.broadcast %cst_87 : f32 to vector<8x128xf32>
    %245 = arith.mulf %244, %211 : vector<8x128xf32>
    %246 = arith.addf %243, %245 : vector<8x128xf32>
    %cst_88 = arith.constant 0.994521915 : f32
    %247 = vector.broadcast %cst_88 : f32 to vector<8x128xf32>
    %248 = arith.mulf %220, %247 : vector<8x128xf32>
    %cst_89 = arith.constant 0.104528464 : f32
    %249 = vector.broadcast %cst_89 : f32 to vector<8x128xf32>
    %250 = arith.mulf %226, %249 : vector<8x128xf32>
    %251 = arith.subf %248, %250 : vector<8x128xf32>
    %cst_90 = arith.constant 3.200000e-01 : f32
    %252 = vector.broadcast %cst_90 : f32 to vector<8x128xf32>
    %253 = arith.mulf %252, %251 : vector<8x128xf32>
    %254 = arith.addf %246, %253 : vector<8x128xf32>
    %cst_91 = arith.constant 0.453990489 : f32
    %255 = vector.broadcast %cst_91 : f32 to vector<8x128xf32>
    %256 = arith.mulf %231, %255 : vector<8x128xf32>
    %cst_92 = arith.constant 0.891006529 : f32
    %257 = vector.broadcast %cst_92 : f32 to vector<8x128xf32>
    %258 = arith.mulf %234, %257 : vector<8x128xf32>
    %259 = arith.addf %256, %258 : vector<8x128xf32>
    %cst_93 = arith.constant 2.000000e-01 : f32
    %260 = vector.broadcast %cst_93 : f32 to vector<8x128xf32>
    %261 = arith.mulf %260, %259 : vector<8x128xf32>
    %262 = arith.subf %254, %261 : vector<8x128xf32>
    %cst_94 = arith.constant 2.750000e+02 : f32
    %263 = vector.broadcast %cst_94 : f32 to vector<8x128xf32>
    %264 = arith.subf %202, %263 : vector<8x128xf32>
    %cst_95 = arith.constant 4.000000e-02 : f32
    %265 = vector.broadcast %cst_95 : f32 to vector<8x128xf32>
    %266 = arith.mulf %264, %265 : vector<8x128xf32>
    %267 = arith.mulf %266, %266 : vector<8x128xf32>
    %cst_96 = arith.constant 0.000000e+00 : f32
    %268 = vector.broadcast %cst_96 : f32 to vector<8x128xf32>
    %269 = arith.subf %268, %267 : vector<8x128xf32>
    %270 = math.exp %269 : vector<8x128xf32>
    %cst_97 = arith.constant 3.000000e+01 : f32
    %271 = vector.broadcast %cst_97 : f32 to vector<8x128xf32>
    %272 = arith.mulf %271, %270 : vector<8x128xf32>
    %273 = arith.mulf %147, %147 : vector<8x128xf32>
    %274 = arith.mulf %273, %273 : vector<8x128xf32>
    %275 = arith.mulf %274, %273 : vector<8x128xf32>
    %276 = arith.mulf %275, %147 : vector<8x128xf32>
    %cst_98 = arith.constant 6.10351565E+9 : f32
    %277 = vector.broadcast %cst_98 : f32 to vector<8x128xf32>
    %278 = arith.addf %276, %277 : vector<8x128xf32>
    %279 = tpu.reciprocal %278 {approx = true} : vector<8x128xf32> -> vector<8x128xf32>
    %280 = arith.mulf %276, %279 : vector<8x128xf32>
    %281 = math.sqrt %280 : vector<8x128xf32>
    %cst_99 = arith.constant 2.000000e+00 : f32
    %282 = vector.broadcast %cst_99 : f32 to vector<8x128xf32>
    %283 = arith.mulf %282, %281 : vector<8x128xf32>
    %cst_100 = arith.constant 0.000000e+00 : f32
    %284 = vector.broadcast %cst_100 : f32 to vector<8x128xf32>
    %285 = arith.subf %284, %283 : vector<8x128xf32>
    %cst_101 = arith.constant 0.0349065848 : f32
    %286 = vector.broadcast %cst_101 : f32 to vector<8x128xf32>
    %287 = arith.mulf %286, %272 : vector<8x128xf32>
    %288 = math.sin %287 : vector<8x128xf32>
    %289 = arith.mulf %285, %288 : vector<8x128xf32>
    %cst_102 = arith.constant 4.500000e-02 : f32
    %290 = vector.broadcast %cst_102 : f32 to vector<8x128xf32>
    %291 = arith.mulf %290, %147 : vector<8x128xf32>
    %cst_103 = arith.constant 1.000000e+00 : f32
    %292 = vector.broadcast %cst_103 : f32 to vector<8x128xf32>
    %293 = arith.addf %292, %291 : vector<8x128xf32>
    %294 = tpu.reciprocal %293 {approx = true} : vector<8x128xf32> -> vector<8x128xf32>
    %295 = arith.mulf %293, %294 : vector<8x128xf32>
    %cst_104 = arith.constant 2.000000e+00 : f32
    %296 = vector.broadcast %cst_104 : f32 to vector<8x128xf32>
    %297 = arith.subf %296, %295 : vector<8x128xf32>
    %298 = arith.mulf %294, %297 : vector<8x128xf32>
    %299 = arith.mulf %180, %298 : vector<8x128xf32>
    %cst_105 = arith.constant 1.500000e-02 : f32
    %300 = vector.broadcast %cst_105 : f32 to vector<8x128xf32>
    %301 = arith.mulf %300, %147 : vector<8x128xf32>
    %302 = arith.mulf %301, %262 : vector<8x128xf32>
    %cst_106 = arith.constant 1.000000e+00 : f32
    %303 = vector.broadcast %cst_106 : f32 to vector<8x128xf32>
    %304 = arith.addf %303, %302 : vector<8x128xf32>
    %305 = tpu.reciprocal %304 {approx = true} : vector<8x128xf32> -> vector<8x128xf32>
    %306 = arith.mulf %304, %305 : vector<8x128xf32>
    %cst_107 = arith.constant 2.000000e+00 : f32
    %307 = vector.broadcast %cst_107 : f32 to vector<8x128xf32>
    %308 = arith.subf %307, %306 : vector<8x128xf32>
    %309 = arith.mulf %305, %308 : vector<8x128xf32>
    %310 = arith.mulf %188, %309 : vector<8x128xf32>
    %311 = arith.mulf %299, %299 : vector<8x128xf32>
    %312 = arith.mulf %310, %310 : vector<8x128xf32>
    %313 = arith.addf %311, %312 : vector<8x128xf32>
    %314 = arith.mulf %289, %299 : vector<8x128xf32>
    %315 = arith.mulf %314, %310 : vector<8x128xf32>
    %316 = arith.addf %313, %315 : vector<8x128xf32>
    %317 = math.sqrt %316 : vector<8x128xf32>
    %318 = arith.subf %4, %8 : vector<8x128xf32>
    %319 = arith.subf %6, %10 : vector<8x128xf32>
    %320 = arith.mulf %318, %318 : vector<8x128xf32>
    %321 = arith.mulf %319, %319 : vector<8x128xf32>
    %322 = arith.addf %320, %321 : vector<8x128xf32>
    %323 = vector.shape_cast %322 : vector<8x128xf32> to vector<1x8x128xf32>
    %cst_108 = arith.constant dense<0.000000e+00> : vector<8x128xf32>
    %324 = vector.multi_reduction <add>, %323, %cst_108 [0] : vector<1x8x128xf32> to vector<8x128xf32>
    %325 = vector.shape_cast %317 : vector<8x128xf32> to vector<1x8x128xf32>
    %cst_109 = arith.constant dense<0.000000e+00> : vector<8x128xf32>
    %326 = vector.multi_reduction <add>, %325, %cst_109 [0] : vector<1x8x128xf32> to vector<8x128xf32>
    %c0_110 = arith.constant 0 : index
    %c0_111 = arith.constant 0 : index
    %c0_112 = arith.constant 0 : index
    %c0_113 = arith.constant 0 : index
    %327 = vector.load %arg3[%c0_110, %c0_111, %c0_112, %c0_113] : memref<1x2x8x128xf32, #tpu.memory_space<vmem>>, vector<1x1x8x128xf32>
    %328 = vector.shape_cast %327 : vector<1x1x8x128xf32> to vector<8x128xf32>
    %329 = arith.addf %328, %324 : vector<8x128xf32>
    %c0_114 = arith.constant 0 : index
    %c0_115 = arith.constant 0 : index
    %c0_116 = arith.constant 0 : index
    %c0_117 = arith.constant 0 : index
    %330 = vector.load %arg3[%c0_114, %c0_115, %c0_116, %c0_117] : memref<1x2x8x128xf32, #tpu.memory_space<vmem>>, vector<1x1x8x128xf32>
    %331 = vector.shape_cast %330 : vector<1x1x8x128xf32> to vector<8x128xf32>
    %332 = vector.shape_cast %329 : vector<8x128xf32> to vector<1x1x8x128xf32>
    tpu.vector_store %arg3[%c0_114, %c0_115, %c0_116, %c0_117], %332 {strides = array<i32>} : memref<1x2x8x128xf32, #tpu.memory_space<vmem>>, vector<1x1x8x128xf32>,
    %c0_118 = arith.constant 0 : index
    %c1_119 = arith.constant 1 : index
    %c0_120 = arith.constant 0 : index
    %c0_121 = arith.constant 0 : index
    %333 = vector.load %arg3[%c0_118, %c1_119, %c0_120, %c0_121] : memref<1x2x8x128xf32, #tpu.memory_space<vmem>>, vector<1x1x8x128xf32>
    %334 = vector.shape_cast %333 : vector<1x1x8x128xf32> to vector<8x128xf32>
    %335 = arith.addf %334, %326 : vector<8x128xf32>
    %c0_122 = arith.constant 0 : index
    %c1_123 = arith.constant 1 : index
    %c0_124 = arith.constant 0 : index
    %c0_125 = arith.constant 0 : index
    %336 = vector.load %arg3[%c0_122, %c1_123, %c0_124, %c0_125] : memref<1x2x8x128xf32, #tpu.memory_space<vmem>>, vector<1x1x8x128xf32>
    %337 = vector.shape_cast %336 : vector<1x1x8x128xf32> to vector<8x128xf32>
    %338 = vector.shape_cast %335 : vector<8x128xf32> to vector<1x1x8x128xf32>
    tpu.vector_store %arg3[%c0_122, %c1_123, %c0_124, %c0_125], %338 {strides = array<i32>} : memref<1x2x8x128xf32, #tpu.memory_space<vmem>>, vector<1x1x8x128xf32>,
    return
  }
  func.func @transform_0(%arg0: i32, %arg1: i32) -> (i32, i32, i32) {
    %c1_i32 = arith.constant 1 : i32
    %0 = arith.muli %arg0, %c1_i32 : i32
    %1 = arith.addi %0, %arg1 : i32
    %c0_i32 = arith.constant 0 : i32
    %c0_i32_0 = arith.constant 0 : i32
    %c0_i32_1 = arith.constant 0 : i32
    return %c0_i32, %1, %c0_i32_0 : i32, i32, i32
  }
  func.func @transform_1(%arg0: i32, %arg1: i32) -> (i32, i32, i32, i32) {
    %c0_i32 = arith.constant 0 : i32
    %c0_i32_0 = arith.constant 0 : i32
    %c0_i32_1 = arith.constant 0 : i32
    %c0_i32_2 = arith.constant 0 : i32
    return %arg0, %c0_i32, %c0_i32_0, %c0_i32_1 : i32, i32, i32, i32
  }
}

</mosaic_0001>

<bundles_post_ra>
// kernel: tpu_custom_call.1
= control target key start
LH: loop header
LB: loop body
LE: loop exit
PB: predicated region body
PF: predicated region fallthrough
CT: control target
= control target key end

     0   :  { %6 = vsyncpa [#allocation3], 0  ;;  %s1382_s0 = inlined_call_operand.hbm [shape: f32[4,8,128], index: 0, kind: input, shape index: {}]   ;;  %s1383_s1 = inlined_call_operand.hbm [shape: f32[1,2,8,128], index: 1, kind: output, shape index: {}]  }
   0x1   :  { %7 = vsyncpa [#allocation4], 0  ;;  %s988_s6 = smov [#allocation2]  }
   0x2   :  { %s16_s7 = sshll.u32 %s988_s6, 4  ;;  %s17_s7 = int_to_ptr.vmem [resolvable:$true] %s16_s7 }
   0x3   :  { %s952_s8 = scalar_lea.vmem %s17_s7, 512  ;;  %p957_p1 = scmp.lt.s32.totalorder %s17_s7, %s17_s7 }
   0x4   :  { %p953_p0 = scmp.ne.s32.totalorder %s17_s7, %s952_s8  ;;  %p958_p2 = scmp.lt.s32.totalorder %s952_s8, %s952_s8 }
   0x6   :  { %p959_p3 = por %p958_p2, %p957_p1 }
   0x8   :  { %p960_p4 = pnand %p959_p3, %p953_p0 }
   0xa   :  { %963 = shalt.err (!%p960_p4)
}
   0xb   :  { %s989_s9 = smov 128   ;;  %s990_s10 = smov 8  }
   0xc   :  { %22 = dma.hbm_to_vmem [thread:$0]  %s1382_s0, 512, %s17_s7, [#allocation3], %s989_s9, %s989_s9, %s990_s10  }
   0xd   :  { %984 = dma.done.wait [#allocation3], 512  }
   0xe   :  { %985 = vsyncadd [#allocation3], 4294966784  ;;  %v1017_v0 = vld [vmem:[#allocation2 + $0x8] sm:$0xff]  ;;  %v1019_v1 = vld [vmem:[#allocation2 + $0x18] sm:$0xff]  ;;  %s1000_s0 = smov [#allocation5]  }
   0xf   :  { %882 = vrcp.f32 %v1017_v0  ;;  %v1023_v2 = vld [vmem:[#allocation2] sm:$0xff]  ;;  %v1025_v3 = vld [vmem:[#allocation2 + $0x10] sm:$0xff]  ;;  %s823_s13 = sshll.u32 %s1000_s0, 4  ;;  %s824_s13 = int_to_ptr.vmem [resolvable:$true] %s823_s13 }
  0x10   :  { %884 = vrcp.f32 %v1019_v1  ;;  %v45_v4 = vsub.f32 1.0, %v1023_v2  ;;  %v79_v6 = vsub.f32 1.0, %v1025_v3  ;;  %s964_s14 = scalar_lea.vmem %s824_s13, 256  ;;  %p969_p6 = scmp.lt.s32.totalorder %s824_s13, %s824_s13 }
  0x11   :  { %p965_p5 = scmp.ne.s32.totalorder %s824_s13, %s964_s14  ;;  %p970_p7 = scmp.lt.s32.totalorder %s964_s14, %s964_s14 }
  0x12   :  { %v46_v11 = vsub.f32 %v45_v4, %v1017_v0  ;;  %v80_v13 = vsub.f32 %v79_v6, %v1019_v1 }
  0x13   :  { %p971_p8 = por %p970_p7, %p969_p6 }
  0x15   :  { %p972_p9 = pnand %p971_p8, %p965_p5 }
  0x1c   :  { %v883_v5 = vpop.eup %882 }
  0x1d   :  { %v885_v7 = vpop.eup %884  ;;  %v41_v8 = vmul.f32 %v883_v5, %v1017_v0 }
  0x1e   :  { %v75_v9 = vmul.f32 %v885_v7, %v1019_v1 }
  0x1f   :  { %v42_v10 = vsub.f32 2.0, %v41_v8 }
  0x20   :  { %v76_v12 = vsub.f32 2.0, %v75_v9 }
  0x21   :  { %v43_v14 = vmul.f32 %v883_v5, %v42_v10 }
  0x22   :  { %v77_v15 = vmul.f32 %v885_v7, %v76_v12 }
  0x23   :  { %v44_v16 = vmul.f32 %v43_v14, %v1023_v2  ;;  %v47_v17 = vmul.f32 %v46_v11, %v43_v14 }
  0x24   :  { %v78_v18 = vmul.f32 %v77_v15, %v1025_v3  ;;  %v81_v19 = vmul.f32 %v80_v13, %v77_v15 }
  0x25   :  { %v48_v20 = vmul.f32 0.01052111, %v44_v16  ;;  %v59_v21 = vmul.f32 0.0091841705, %v47_v17 }
  0x26   :  { %v82_v22 = vmul.f32 0.01052111, %v78_v18  ;;  %v93_v23 = vmul.f32 0.0091841705, %v81_v19 }
  0x27   :  { %v49_v24 = vmax.f32 %v48_v20, 1e-12  ;;  %v60_v25 = vmax.f32 %v59_v21, 1e-12  ;;  %v56_v44 = vmul.f32 7.787037, %v48_v20 }
  0x28   :  { %v83_v26 = vmax.f32 %v82_v22, 1e-12  ;;  %v94_v27 = vmax.f32 %v93_v23, 1e-12  ;;  %v67_v45 = vmul.f32 7.787037, %v59_v21 }
  0x29   :  { %886 = vlog2.f32 %v49_v24  ;;  %v90_v46 = vmul.f32 7.787037, %v82_v22  ;;  %v101_v47 = vmul.f32 7.787037, %v93_v23  ;;  %v57_v48 = vadd.f32 0.13793103, %v56_v44 }
  0x2a   :  { %888 = vlog2.f32 %v60_v25  ;;  %vm55_vm0 = vcmp.gt.f32.partialorder %v48_v20, 0.008856452  ;;  %v68_v49 = vadd.f32 0.13793103, %v67_v45  ;;  %vm66_vm1 = vcmp.gt.f32.partialorder %v59_v21, 0.008856452 }
  0x2b   :  { %890 = vlog2.f32 %v83_v26  ;;  %v91_v50 = vadd.f32 0.13793103, %v90_v46  ;;  %vm89_vm2 = vcmp.gt.f32.partialorder %v82_v22, 0.008856452  ;;  %v102_v52 = vadd.f32 0.13793103, %v101_v47 }
  0x2c   :  { %892 = vlog2.f32 %v94_v27  ;;  %vm100_vm3 = vcmp.gt.f32.partialorder %v93_v23, 0.008856452 }
  0x36   :  { %v887_v28 = vpop.eup %886 }
  0x37   :  { %v889_v29 = vpop.eup %888  ;;  %v51_v30 = vmul.f32 0.6931472, %v887_v28 }
  0x38   :  { %v891_v31 = vpop.eup %890  ;;  %v62_v32 = vmul.f32 0.6931472, %v889_v29 }
  0x39   :  { %v893_v33 = vpop.eup %892  ;;  %v52_v34 = vmul.f32 0.33333334, %v51_v30  ;;  %v85_v35 = vmul.f32 0.6931472, %v891_v31 }
  0x3a   :  { %v63_v36 = vmul.f32 0.33333334, %v62_v32  ;;  %v96_v37 = vmul.f32 0.6931472, %v893_v33 }
  0x3b   :  { %v53_v38 = vmul.f32 1.442695, %v52_v34  ;;  %v86_v39 = vmul.f32 0.33333334, %v85_v35 }
  0x3c   :  { %v64_v40 = vmul.f32 1.442695, %v63_v36  ;;  %v97_v41 = vmul.f32 0.33333334, %v96_v37 }
  0x3d   :  { %894 = vpow2.f32 %v53_v38  ;;  %v87_v42 = vmul.f32 1.442695, %v86_v39 }
  0x3e   :  { %896 = vpow2.f32 %v64_v40  ;;  %v98_v43 = vmul.f32 1.442695, %v97_v41 }
  0x3f   :  { %898 = vpow2.f32 %v87_v42 }
  0x40   :  { %900 = vpow2.f32 %v98_v43 }
  0x4a   :  { %v895_v51 = vpop.eup %894 }
  0x4b   :  { %v897_v53 = vpop.eup %896  ;;  %v58_v54 = vsel %vm55_vm0, %v895_v51, %v57_v48 }
  0x4c   :  { %v899_v55 = vpop.eup %898  ;;  %v69_v56 = vsel %vm66_vm1, %v897_v53, %v68_v49  ;;  %v835_v57 = vadd.f32 -0.21544346, %v58_v54 }
  0x4d   :  { %v901_v58 = vpop.eup %900  ;;  %v72_v59 = vsub.f32 0.21544346, %v69_v56  ;;  %v92_v60 = vsel %vm89_vm2, %v899_v55, %v91_v50 }
  0x4e   :  { %v71_v61 = vmul.f32 500.0, %v835_v57  ;;  %v103_v62 = vsel %vm100_vm3, %v901_v58, %v102_v52  ;;  %v836_v63 = vadd.f32 -0.21544346, %v92_v60 }
  0x4f   :  { %v1035_v4 = vmul.f32 200.0, %v72_v59  ;;  %v106_v5 = vsub.f32 0.21544346, %v103_v62 }
  0x50   :  { %v105_v6 = vmul.f32 500.0, %v836_v63  ;;  %v108_v7 = vmul.f32 %v71_v61, %v71_v61 }
  0x51   :  { %v1037_v8 = vmul.f32 200.0, %v106_v5  ;;  %v109_v9 = vmul.f32 %v1035_v4, %v1035_v4  ;;  %v1048_v43 = vand.u32 2147483647, %v1035_v4  ;;  %vm201_vm15 = vcmp.eq.f32.partialorder %v1035_v4, 0.0 }
  0x52   :  { %v118_v10 = vmul.f32 %v105_v6, %v105_v6  ;;  %vm204_vm0 = vcmp.ne.f32.partialorder %v1035_v4, %v1035_v4 }
  0x53   :  { %v110_v11 = vadd.f32 %v109_v9, %v108_v7  ;;  %v119_v12 = vmul.f32 %v1037_v8, %v1037_v8  ;;  %v1058_v47 = vand.u32 2147483647, %v1037_v8  ;;  %vm210_vm2 = vcmp.eq.s32.totalorder %v1048_v43, inf }
  0x55   :  { %902 = vrsqrt.f32 %v110_v11  ;;  %v120_v13 = vadd.f32 %v119_v12, %v118_v10  ;;  %vm113_vm4 = vcmp.eq.f32.partialorder %v110_v11, inf  ;;  %v116_v16 = vand.u32 2147483648, %v110_v11 }
  0x56   :  { %vm115_vm5 = vcmp.eq.f32.partialorder %v110_v11, 0.0 }
  0x57   :  { %904 = vrsqrt.f32 %v120_v13  ;;  %vm123_vm6 = vcmp.eq.f32.partialorder %v120_v13, inf  ;;  %v126_v19 = vand.u32 2147483648, %v120_v13  ;;  %vm125_vm7 = vcmp.eq.f32.partialorder %v120_v13, 0.0 }
  0x62   :  { %v903_v14 = vpop.eup %902 }
  0x63   :  { %v112_v15 = vmul.f32 %v903_v14, %v110_v11 }
  0x64   :  { %v905_v17 = vpop.eup %904 }
  0x65   :  { %v114_v18 = vsel %vm113_vm4, %v110_v11, %v112_v15  ;;  %v122_v20 = vmul.f32 %v905_v17, %v120_v13 }
  0x66   :  { %v117_v21 = vsel %vm115_vm5, %v116_v16, %v114_v18 }
  0x67   :  { %v124_v22 = vsel %vm123_vm6, %v120_v13, %v122_v20  ;;  %vm252_vm6 = vcmp.eq.f32.partialorder %v1037_v8, 0.0 }
  0x68   :  { %v127_v23 = vsel %vm125_vm7, %v126_v19, %v124_v22 }
  0x69   :  { %v128_v24 = vadd.f32 %v127_v23, %v117_v21 }
  0x6b   :  { %v129_v25 = vmul.f32 0.5, %v128_v24 }
  0x6d   :  { %v130_v26 = vmul.f32 %v129_v25, %v129_v25 }
  0x6f   :  { %v131_v27 = vmul.f32 %v130_v26, %v130_v26 }
  0x71   :  { %v132_v28 = vmul.f32 %v131_v27, %v130_v26 }
  0x73   :  { %v133_v29 = vmul.f32 %v132_v28, %v129_v25 }
  0x75   :  { %v134_v30 = vadd.f32 6.1035156e+09, %v133_v29 }
  0x77   :  { %906 = vrcp.f32 %v134_v30 }
  0x84   :  { %v907_v31 = vpop.eup %906 }
  0x85   :  { %v136_v32 = vmul.f32 %v907_v31, %v133_v29 }
  0x87   :  { %908 = vrsqrt.f32 %v136_v32  ;;  %vm139_vm8 = vcmp.eq.f32.partialorder %v136_v32, inf  ;;  %v142_v34 = vand.u32 2147483648, %v136_v32  ;;  %vm141_vm9 = vcmp.eq.f32.partialorder %v136_v32, 0.0 }
  0x94   :  { %v909_v33 = vpop.eup %908 }
  0x95   :  { %v138_v35 = vmul.f32 %v909_v33, %v136_v32 }
  0x97   :  { %v140_v36 = vsel %vm139_vm8, %v136_v32, %v138_v35 }
  0x98   :  { %v143_v37 = vsel %vm141_vm9, %v142_v34, %v140_v36 }
  0x99   :  { %v144_v38 = vsub.f32 1.0, %v143_v37 }
  0x9b   :  { %v145_v39 = vmul.f32 0.5, %v144_v38 }
  0x9d   :  { %v146_v40 = vadd.f32 1.0, %v145_v39 }
  0x9f   :  { %v1043_v41 = vmul.f32 %v146_v40, %v71_v61  ;;  %v1045_v42 = vmul.f32 %v146_v40, %v105_v6 }
  0xa1   :  { %v149_v44 = vmul.f32 %v1043_v41, %v1043_v41  ;;  %v158_v45 = vmul.f32 %v1045_v42, %v1045_v42  ;;  %v1055_v46 = vand.u32 2147483647, %v1043_v41  ;;  %v1063_v51 = vand.u32 2147483647, %v1045_v42 }
  0xa2   :  { %vm199_vm1 = vcmp.lt.s32.totalorder %v1043_v41, 0  ;;  %vm196_vm3 = vcmp.lt.f32.partialorder %v1043_v41, 0.0  ;;  %vm203_vm4 = vcmp.ne.f32.partialorder %v1043_v41, %v1043_v41  ;;  %vm250_vm8 = vcmp.lt.s32.totalorder %v1045_v42, 0 }
  0xa3   :  { %v150_v48 = vadd.f32 %v149_v44, %v109_v9  ;;  %v159_v49 = vadd.f32 %v158_v45, %v119_v12  ;;  %v172_v50 = vmax.f32 %v1055_v46, %v1048_v43  ;;  %v223_v52 = vmax.f32 %v1063_v51, %v1058_v47 }
  0xa4   :  { %v171_v53 = vmin.f32 %v1055_v46, %v1048_v43  ;;  %v222_v56 = vmin.f32 %v1063_v51, %v1058_v47  ;;  %vm193_vm14 = vcmp.gt.f32.partialorder %v1048_v43, %v1055_v46  ;;  %vm244_vm5 = vcmp.gt.f32.partialorder %v1058_v47, %v1063_v51 }
  0xa5   :  { %910 = vrsqrt.f32 %v150_v48  ;;  %vm153_vm10 = vcmp.eq.f32.partialorder %v150_v48, inf  ;;  %v156_v55 = vand.u32 2147483648, %v150_v48  ;;  %vm155_vm11 = vcmp.eq.f32.partialorder %v150_v48, 0.0 }
  0xa6   :  { %912 = vrsqrt.f32 %v159_v49  ;;  %vm162_vm12 = vcmp.eq.f32.partialorder %v159_v49, inf  ;;  %v165_v59 = vand.u32 2147483648, %v159_v49  ;;  %vm164_vm13 = vcmp.eq.f32.partialorder %v159_v49, 0.0 }
  0xa7   :  { %914 = vrcp.f32 %v172_v50  ;;  %vm209_vm7 = vcmp.eq.s32.totalorder %v1055_v46, inf  ;;  %vm254_vm9 = vcmp.ne.f32.partialorder %v1045_v42, %v1045_v42 }
  0xa8   :  { %916 = vrcp.f32 %v223_v52 }
  0xb2   :  { %v911_v54 = vpop.eup %910 }
  0xb3   :  { %v913_v57 = vpop.eup %912  ;;  %v152_v58 = vmul.f32 %v911_v54, %v150_v48 }
  0xb4   :  { %v915_v60 = vpop.eup %914  ;;  %v161_v61 = vmul.f32 %v913_v57, %v159_v49 }
  0xb5   :  { %v154_v62 = vsel %vm153_vm10, %v150_v48, %v152_v58  ;;  %v174_v63 = vmul.f32 %v915_v60, %v171_v53  ;;  %v917_v5 = vpop.eup %916  ;;  %v991_v60 = vmov 0.0   ;;  %vm255_vm10 = vcmp.ne.f32.partialorder %v1037_v8, %v1037_v8 }
  0xb6   :  { %v1071_v6 = vsel %vm155_vm11, %v156_v55, %v154_v62  ;;  %v163_v7 = vsel %vm162_vm12, %v159_v49, %v161_v61  ;;  %v225_v11 = vmul.f32 %v917_v5, %v222_v56  ;;  %v200_v61 = vsel %vm199_vm1, 3.1415927, %v991_v60  ;;  %vm1107_vm11 = vmor %vm203_vm4, %vm204_vm0 }
  0xb7   :  { %v1073_v9 = vsel %vm164_vm13, %v165_v59, %v163_v7  ;;  %v175_v10 = vmul.f32 %v174_v63, %v174_v63  ;;  %vm247_vm12 = vcmp.lt.f32.partialorder %v1045_v42, 0.0  ;;  %vm260_vm13 = vcmp.eq.s32.totalorder %v1063_v51, inf  ;;  %vm211_vm0 = vmand %vm209_vm7, %vm210_vm2 }
  0xb8   :  { %v1077_v12 = vadd.f32 %v1073_v9, %v1071_v6  ;;  %v280_v13 = vsub.f32 %v1073_v9, %v1071_v6  ;;  %v1083_v14 = vmul.f32 %v1073_v9, %v1071_v6  ;;  %v226_v16 = vmul.f32 %v225_v11, %v225_v11  ;;  %vm256_vm1 = vmor %vm254_vm9, %vm255_vm10 }
  0xb9   :  { %v176_v15 = vmul.f32 0.002785687, %v175_v10  ;;  %v992_v7 = vmov 0.7853982   ;;  %v265_v42 = vand.u32 2147483648, %v1037_v8 }
  0xba   :  { %v227_v18 = vmul.f32 0.002785687, %v226_v16 }
  0xbb   :  { %v177_v17 = vadd.f32 -0.015866, %v176_v15  ;;  %v251_v15 = vsel %vm250_vm8, 3.1415927, %v991_v60 }
  0xbc   :  { %v228_v20 = vadd.f32 -0.015866, %v227_v18 }
  0xbd   :  { %v178_v19 = vmul.f32 %v177_v17, %v175_v10  ;;  %v259_v17 = vsel %vm247_vm12, 2.3561945, %v992_v7 }
  0xbe   :  { %v229_v22 = vmul.f32 %v228_v20, %v226_v16 }
  0xbf   :  { %v179_v21 = vadd.f32 0.04247222, %v178_v19 }
  0xc0   :  { %v230_v24 = vadd.f32 0.04247222, %v229_v22 }
  0xc1   :  { %v180_v23 = vmul.f32 %v179_v21, %v175_v10 }
  0xc2   :  { %v231_v26 = vmul.f32 %v230_v24, %v226_v16 }
  0xc3   :  { %v181_v25 = vadd.f32 -0.074975304, %v180_v23 }
  0xc4   :  { %v232_v28 = vadd.f32 -0.074975304, %v231_v26 }
  0xc5   :  { %v182_v27 = vmul.f32 %v181_v25, %v175_v10 }
  0xc6   :  { %v233_v30 = vmul.f32 %v232_v28, %v226_v16 }
  0xc7   :  { %v183_v29 = vadd.f32 0.1064488, %v182_v27 }
  0xc8   :  { %v234_v32 = vadd.f32 0.1064488, %v233_v30 }
  0xc9   :  { %v184_v31 = vmul.f32 %v183_v29, %v175_v10 }
  0xca   :  { %v235_v34 = vmul.f32 %v234_v32, %v226_v16 }
  0xcb   :  { %v185_v33 = vadd.f32 -0.14207031, %v184_v31 }
  0xcc   :  { %v236_v36 = vadd.f32 -0.14207031, %v235_v34 }
  0xcd   :  { %v186_v35 = vmul.f32 %v185_v33, %v175_v10 }
  0xce   :  { %v237_v38 = vmul.f32 %v236_v36, %v226_v16 }
  0xcf   :  { %v187_v37 = vadd.f32 0.19993454, %v186_v35 }
  0xd0   :  { %v238_v40 = vadd.f32 0.19993454, %v237_v38  ;;  %v993_v38 = vmov -180.0  }
  0xd1   :  { %v188_v39 = vmul.f32 %v187_v37, %v175_v10 }
  0xd2   :  { %v239_v45 = vmul.f32 %v238_v40, %v226_v16 }
  0xd3   :  { %v189_v44 = vadd.f32 -0.33333147, %v188_v39 }
  0xd4   :  { %v240_v49 = vadd.f32 -0.33333147, %v239_v45 }
  0xd5   :  { %v190_v48 = vmul.f32 %v189_v44, %v175_v10  ;;  %v208_v10 = vsel %vm196_vm3, 2.3561945, %v992_v7 }
  0xd6   :  { %v241_v52 = vmul.f32 %v240_v49, %v226_v16  ;;  %v214_v16 = vand.u32 2147483648, %v1035_v4  ;;  %v1133_v4 = vmul.f32 0.5, %v1077_v12 }
  0xd7   :  { %v191_v50 = vmul.f32 %v190_v48, %v174_v63 }
  0xd8   :  { %v242_v54 = vmul.f32 %v241_v52, %v225_v11  ;;  %v776_v29 = vmul.f32 0.045, %v1133_v4 }
  0xd9   :  { %v192_v53 = vadd.f32 %v191_v50, %v174_v63 }
  0xda   :  { %v243_v56 = vadd.f32 %v242_v54, %v225_v11  ;;  %v777_v33 = vadd.f32 1.0, %v776_v29 }
  0xdb   :  { %v194_v55 = vsub.f32 1.5707964, %v192_v53 }
  0xdc   :  { %v245_v58 = vsub.f32 1.5707964, %v243_v56  ;;  %918 = vrcp.f32 %v777_v33 }
  0xdd   :  { %v195_v57 = vsel %vm193_vm14, %v194_v55, %v192_v53  ;;  %vm261_vm14 = vcmp.eq.s32.totalorder %v1058_v47, inf }
  0xde   :  { %v197_v59 = vsub.f32 3.1415927, %v195_v57  ;;  %v246_v63 = vsel %vm244_vm5, %v245_v58, %v243_v56 }
  0xdf   :  { %v248_v11 = vsub.f32 3.1415927, %v246_v63 }
  0xe0   :  { %v198_v5 = vsel %vm196_vm3, %v197_v59, %v195_v57  ;;  %vm262_vm3 = vmand %vm260_vm13, %vm261_vm14 }
  0xe1   :  { %v202_v51 = vsel %vm201_vm15, %v200_v61, %v198_v5  ;;  %v249_v41 = vsel %vm247_vm12, %v248_v11, %v246_v63 }
  0xe2   :  { %v206_v47 = vsel %vm1107_vm11, nan, %v202_v51  ;;  %v253_v46 = vsel %vm252_vm6, %v251_v15, %v249_v41 }
  0xe3   :  { %v212_v43 = vsel %vm211_vm0, %v208_v10, %v206_v47  ;;  %v257_v19 = vsel %vm256_vm1, nan, %v253_v46 }
  0xe4   :  { %v213_v18 = vand.u32 2147483647, %v212_v43  ;;  %v263_v20 = vsel %vm262_vm3, %v259_v17, %v257_v19 }
  0xe5   :  { %v264_v22 = vand.u32 2147483647, %v263_v20 }
  0xe6   :  { %v215_v21 = vor.u32 %v214_v16, %v213_v18 }
  0xe7   :  { %v266_v24 = vor.u32 %v265_v42, %v264_v22 }
  0xe8   :  { %v216_v23 = vmul.f32 57.29578, %v215_v21 }
  0xe9   :  { %v267_v26 = vmul.f32 57.29578, %v266_v24  ;;  %v919_v7 = vpop.eup %918  ;;  %v994_v24 = vmov 683565275  }
  0xea   :  { %vm217_vm15 = vcmp.lt.f32.partialorder %v216_v23, 0.0  ;;  %v218_v25 = vadd.f32 360.0, %v216_v23  ;;  %v779_v41 = vmul.f32 %v919_v7, %v777_v33  ;;  %v997_v33 = vmov 2102212464  }
  0xeb   :  { %vm268_vm2 = vcmp.lt.f32.partialorder %v267_v26, 0.0  ;;  %v269_v28 = vadd.f32 360.0, %v267_v26 }
  0xec   :  { %v219_v27 = vsel %vm217_vm15, %v218_v25, %v216_v23  ;;  %v780_v43 = vsub.f32 2.0, %v779_v41 }
  0xed   :  { %v270_v30 = vsel %vm268_vm2, %v269_v28, %v267_v26  ;;  %v995_v26 = vmov 2475754826  }
  0xee   :  { %v271_v31 = vsub.f32 %v219_v27, %v270_v30  ;;  %v272_v32 = vsub.f32 %v270_v30, %v219_v27  ;;  %v396_v8 = vadd.f32 %v270_v30, %v219_v27  ;;  %v1156_v28 = vmul.f32 %v919_v7, %v780_v43 }
  0xf0   :  { %vm273_vm4 = vcmp.gt.f32.partialorder %v271_v31, 180.0  ;;  %vm275_vm5 = vcmp.lt.f32.partialorder %v271_v31, -180.0  ;;  %v397_v34 = vand.u32 2147483647, %v271_v31  ;;  %v399_v35 = vmul.f32 0.5, %v396_v8 }
  0xf1   :  { %v274_v36 = vsel %vm273_vm4, 1.0, %v991_v60  ;;  %v276_v37 = vsel %vm275_vm5, 1.0, %v991_v60  ;;  %vm400_vm6 = vcmp.lt.f32.partialorder %v396_v8, 360.0 }
  0xf2   :  { %v277_v12 = vsub.f32 %v274_v36, %v276_v37  ;;  %vm398_vm7 = vcmp.gt.f32.partialorder %v397_v34, 180.0  ;;  %v401_v39 = vsel %vm400_vm6, 180.0, %v993_v38 }
  0xf3   :  { %v402_v40 = vsel %vm398_vm7, %v401_v39, 0.0 }
  0xf4   :  { %v278_v44 = vmul.f32 360.0, %v277_v12  ;;  %v403_v45 = vadd.f32 %v402_v40, %v399_v35  ;;  %v998_v35 = vmov 920167782  }
  0xf6   :  { %v279_v48 = vadd.f32 %v278_v44, %v272_v32  ;;  %v1136_v49 = vmul.f32 0.017453292, %v403_v45  ;;  %v852_v50 = vadd.f32 -275.0, %v403_v45  ;;  %v996_v32 = vmov 2131351028  }
  0xf7   :  { %v999_v45 = vmov 1326507024  }
  0xf8   :  { %v1138_v52 = vmul.f32 0.008726646, %v279_v48  ;;  %v405_v53 = vand.u32 2147483647, %v1136_v49  ;;  %v408_v54 = vand.u32 2139095040, %v1136_v49 }
  0xf9   :  { %v648_v55 = vmul.f32 0.04, %v852_v50 }
  0xfa   :  { %v291_v56 = vand.u32 2147483647, %v1138_v52  ;;  %v294_v57 = vand.u32 2139095040, %v1138_v52  ;;  %v409_v58 = vshrl.u32 %v408_v54, 23  ;;  %v412_v59 = vand.u32 8388607, %v405_v53 }
  0xfb   :  { %v649_v60 = vmul.f32 %v648_v55, %v648_v55  ;;  %vm293_vm6 = vcmp.lt.s32.totalorder %v1138_v52, 0 }
  0xfc   :  { %v295_v61 = vshrl.u32 %v294_v57, 23  ;;  %v298_v62 = vand.u32 8388607, %v291_v56  ;;  %v841_v63 = vadd.s32 4294967169, %v409_v58  ;;  %v413_v15 = vor.u32 8388608, %v412_v59 }
  0xfd   :  { %v650_v5 = vsub.f32 0.0, %v649_v60  ;;  %vm1271_vm7 = vcmp.le.f32.partialorder %v291_v56, 0.7853982 }
  0xfe   :  { %v837_v10 = vadd.s32 4294967169, %v295_v61  ;;  %v299_v11 = vor.u32 8388608, %v298_v62  ;;  %v415_v51 = vadd.s32 1, %v841_v63  ;;  %v1150_v42 = vshll.u32 %v413_v15, 8 }
  0xff   :  { %v651_v16 = vmul.f32 1.442695, %v650_v5 }
 0x100   :  { %v301_v47 = vadd.s32 1, %v837_v10  ;;  %vm416_vm8 = vcmp.gt.s32.totalorder %v415_v51, 0  ;;  %v1148_v18 = vshll.u32 %v299_v11, 8 }
 0x101   :  { %v417_v17 = vsel %vm416_vm8, %v415_v51, 0  ;;  %920 = vpow2.f32 %v651_v16 }
 0x102   :  { %vm302_vm9 = vcmp.gt.s32.totalorder %v301_v47, 0  ;;  %v419_v19 = vand.u32 31, %v417_v17  ;;  %v1152_v22 = vshrl.u32 %v417_v17, 5  ;;  %922 = vrsqrt.f32 %v1083_v14 }
 0x103   :  { %v303_v46 = vsel %vm302_vm9, %v301_v47, 0 }
 0x104   :  { %v304_v20 = vshrl.u32 %v303_v46, 5  ;;  %v305_v21 = vand.u32 31, %v303_v46  ;;  %v420_v23 = vsub.s32 32, %v419_v19  ;;  %v422_v25 = vshll.u32 %v994_v24, %v419_v19 }
 0x105   :  { %v425_v27 = vshll.u32 %v995_v26, %v419_v19  ;;  %v428_v37 = vshll.u32 %v996_v32, %v419_v19  ;;  %vm437_vm14 = vcmp.lt.s32.totalorder %v1152_v22, 1  ;;  %vm438_vm0 = vcmp.lt.s32.totalorder %v1152_v22, 2 }
 0x106   :  { %v306_v29 = vsub.s32 32, %v305_v21  ;;  %v308_v30 = vshll.u32 %v994_v24, %v305_v21  ;;  %v311_v31 = vshll.u32 %v995_v26, %v305_v21  ;;  %v314_v8 = vshll.u32 %v996_v32, %v305_v21 }
 0x107   :  { %v317_v34 = vshll.u32 %v997_v33, %v305_v21  ;;  %v320_v36 = vshll.u32 %v998_v35, %v305_v21  ;;  %vm323_vm10 = vcmp.lt.s32.totalorder %v304_v20, 1  ;;  %vm324_vm11 = vcmp.lt.s32.totalorder %v304_v20, 2 }
 0x108   :  { %v307_v12 = vshrl.u32 %v994_v24, %v306_v29  ;;  %v309_v38 = vshrl.u32 %v995_v26, %v306_v29  ;;  %v312_v39 = vshrl.u32 %v996_v32, %v306_v29  ;;  %v315_v40 = vshrl.u32 %v997_v33, %v306_v29 }
 0x109   :  { %v318_v44 = vshrl.u32 %v998_v35, %v306_v29  ;;  %v321_v48 = vshrl.u32 %v999_v45, %v306_v29  ;;  %vm325_vm12 = vcmp.lt.s32.totalorder %v304_v20, 3  ;;  %vm326_vm13 = vcmp.lt.s32.totalorder %v304_v20, 4 }
 0x10a   :  { %v310_v50 = vor.u32 %v309_v38, %v308_v30  ;;  %v313_v54 = vor.u32 %v312_v39, %v311_v31  ;;  %v316_v55 = vor.u32 %v315_v40, %v314_v8  ;;  %v423_v59 = vshrl.u32 %v995_v26, %v420_v23 }
 0x10b   :  { %v319_v57 = vor.u32 %v318_v44, %v317_v34  ;;  %v322_v58 = vor.u32 %v321_v48, %v320_v36  ;;  %v426_v60 = vshrl.u32 %v996_v32, %v420_v23  ;;  %v421_v15 = vshrl.u32 %v994_v24, %v420_v23 }
 0x10c   :  { %v327_v61 = vsel %vm323_vm10, %v307_v12, %v310_v50  ;;  %v328_v62 = vsel %vm326_vm13, %v316_v55, 2102212464  ;;  %v331_v63 = vsel %vm323_vm10, %v310_v50, %v313_v54  ;;  %v335_v5 = vsel %vm323_vm10, %v313_v54, %v316_v55 }
 0x10d   :  { %v329_v7 = vsel %vm325_vm12, %v313_v54, %v328_v62  ;;  %v332_v10 = vsel %vm326_vm13, %v319_v57, 920167782  ;;  %v336_v11 = vsel %vm326_vm13, %v322_v58, 1326507024  ;;  %v424_v41 = vor.u32 %v423_v59, %v422_v25 }
 0x10e   :  { %v330_v51 = vsel %vm324_vm11, %v327_v61, %v329_v7  ;;  %v333_v47 = vsel %vm325_vm12, %v316_v55, %v332_v10  ;;  %v337_v16 = vsel %vm325_vm12, %v319_v57, %v336_v11  ;;  %v427_v46 = vor.u32 %v426_v60, %v425_v27  ;;  %v921_v34 = vpop.eup %920 }
 0x10f   :  { %v334_v17 = vsel %vm324_vm11, %v331_v63, %v333_v47  ;;  %v338_v43 = vsel %vm324_vm11, %v335_v5, %v337_v16  ;;  %v429_v21 = vshrl.u32 %v997_v33, %v420_v23  ;;  %v431_v25 = vshll.u32 %v997_v33, %v419_v19 }
 0x110   :  { %v1184_v29 = vmul.u32.u64.low %v1148_v18, %v338_v43  ;;  %v1185_v30 = vmul.u32.u64.high %v1148_v18, %v338_v43, %v1184_v29  ;;  %v1188_v31 = vmul.u32.u64.low %v1148_v18, %v334_v17  ;;  %v1189_v8 = vmul.u32.u64.high %v1148_v18, %v334_v17, %v1188_v31 }
 0x111   :  { %v430_v36 = vor.u32 %v429_v21, %v428_v37  ;;  %v432_v12 = vshrl.u32 %v998_v35, %v420_v23  ;;  %v434_v20 = vshll.u32 %v998_v35, %v419_v19  ;;  %v346_v27 = vmul.u32 %v1148_v18, %v330_v51 }
 0x112   :  { %v435_v38 = vshrl.u32 %v999_v45, %v420_v23  ;;  %vm439_vm1 = vcmp.lt.s32.totalorder %v1152_v22, 3  ;;  %vm440_vm3 = vcmp.lt.s32.totalorder %v1152_v22, 4  ;;  %v441_v37 = vsel %vm437_vm14, %v421_v15, %v424_v41 }
 0x113   :  { %v433_v39 = vor.u32 %v432_v12, %v431_v25  ;;  %vm348_vm15 = vc.u32 %v1185_v30, %v1188_v31  ;;  %v349_v40 = vadd.s32 1, %v1189_v8  ;;  %v445_v44 = vsel %vm437_vm14, %v424_v41, %v427_v46 }
 0x114   :  { %v436_v19 = vor.u32 %v435_v38, %v434_v20  ;;  %v442_v18 = vsel %vm440_vm3, %v430_v36, 2102212464  ;;  %v449_v23 = vsel %vm437_vm14, %v427_v46, %v430_v36  ;;  %v653_v50 = vmul.f32 30.0, %v921_v34 }
 0x115   :  { %v446_v48 = vsel %vm440_vm3, %v433_v39, 920167782  ;;  %v350_v54 = vsel %vm348_vm15, %v349_v40, %v1189_v8  ;;  %v443_v55 = vsel %vm439_vm1, %v427_v46, %v442_v18  ;;  %v1231_v47 = vmul.f32 %v1156_v28, %v280_v13 }
 0x116   :  { %v447_v57 = vsel %vm439_vm1, %v430_v36, %v446_v48  ;;  %v450_v58 = vsel %vm440_vm3, %v436_v19, 1326507024  ;;  %v351_v59 = vadd.s32 %v350_v54, %v346_v27  ;;  %v444_v62 = vsel %vm438_vm0, %v441_v37, %v443_v55 }
 0x117   :  { %v448_v60 = vsel %vm438_vm0, %v445_v44, %v447_v57  ;;  %v451_v61 = vsel %vm439_vm1, %v433_v39, %v450_v58  ;;  %v1225_v51 = vmul.f32 0.034906585, %v653_v50  ;;  %v804_v22 = vsub.f32 %v1023_v2, %v1025_v3 }
 0x118   :  { %v452_v63 = vsel %vm438_vm0, %v449_v23, %v451_v61  ;;  %v1218_v5 = vmul.u32.u64.low %v1150_v42, %v448_v60  ;;  %v1219_v7 = vmul.u32.u64.high %v1150_v42, %v448_v60, %v1218_v5  ;;  %v352_v10 = vadd.s32 536870912, %v351_v59 }
 0x119   :  { %v1222_v11 = vmul.u32.u64.low %v1150_v42, %v452_v63  ;;  %v1223_v15 = vmul.u32.u64.high %v1150_v42, %v452_v63, %v1222_v11  ;;  %v460_v41 = vmul.u32 %v1150_v42, %v444_v62  ;;  %v674_v17 = vand.u32 2139095040, %v1225_v51 }
 0x11a   :  { %v353_v16 = vshrl.u32 %v352_v10, 30  ;;  %v805_v43 = vsub.f32 %v1017_v0, %v1019_v1  ;;  %v463_v46 = vadd.s32 1, %v1219_v7  ;;  %v806_v6 = vmul.f32 %v804_v22, %v804_v22 }
 0x11b   :  { %vm462_vm2 = vc.u32 %v1223_v15, %v1218_v5  ;;  %v675_v13 = vshrl.u32 %v674_v17, 23  ;;  %v654_v0 = vmul.f32 %v1133_v4, %v1133_v4  ;;  %v671_v27 = vand.u32 2147483647, %v1225_v51 }
 0x11c   :  { %v354_v21 = vshll.u32 %v353_v16, 30  ;;  %v464_v9 = vsel %vm462_vm2, %v463_v46, %v1219_v7  ;;  %v807_v2 = vmul.f32 %v805_v43, %v805_v43  ;;  %v347_v44 = vadd.s32 %v1188_v31, %v1185_v30 }
 0x11d   :  { %v465_v29 = vadd.s32 %v464_v9, %v460_v41  ;;  %v853_v3 = vadd.s32 4294967169, %v675_v13  ;;  %v655_v37 = vmul.f32 %v654_v0, %v654_v0  ;;  %v377_v18 = vsub.s32 4, %v353_v16 }
 0x11e   :  { %v355_v28 = vsub.s32 %v351_v59, %v354_v21  ;;  %v808_v34 = vadd.f32 %v807_v2, %v806_v6  ;;  %v678_v54 = vand.u32 8388607, %v671_v27  ;;  %v461_v30 = vadd.s32 %v1218_v5, %v1223_v15 }
 0x11f   :  { %v466_v42 = vadd.s32 536870912, %v465_v29  ;;  %v681_v36 = vadd.s32 1, %v853_v3  ;;  %v1256_v59 = vmul.f32 %v655_v37, %v654_v0  ;;  %v1264_v63 = vsel %vm293_vm6, %v377_v18, %v353_v16 }
 0x120   :  { %v357_v8 = vsub.s32 0, %v355_v28  ;;  %813 = vst [vmem:[#allocation5] sm:$0xff] %v808_v34  ;;  %v679_v11 = vor.u32 8388608, %v678_v54  ;;  %vm407_vm13 = vcmp.lt.s32.totalorder %v1136_v49, 0  ;;  %vm1319_vm14 = vcmp.le.f32.partialorder %v405_v53, 0.7853982 }
 0x121   :  { %v1242_v12 = vshrl.u32 %v466_v42, 30  ;;  %vm682_vm4 = vcmp.gt.s32.totalorder %v681_v36, 0  ;;  %vm284_vm1 = vcmp.eq.f32.partialorder %v1083_v14, inf  ;;  %vm286_vm3 = vcmp.eq.f32.partialorder %v1083_v14, 0.0 }
 0x122   :  { %v838_v25 = vmin.u32 %v357_v8, %v355_v28  ;;  %v683_v38 = vsel %vm682_vm4, %v681_v36, 0 }
 0x123   :  { %v468_v20 = vshll.u32 %v1242_v12, 30  ;;  %v685_v40 = vand.u32 31, %v683_v38  ;;  %v684_v43 = vshrl.u32 %v683_v38, 5 }
 0x124   :  { %v359_v1 = vclz %v838_v25 }
 0x125   :  { %v1248_v19 = vsub.s32 %v465_v29, %v468_v20  ;;  %v686_v48 = vsub.s32 32, %v685_v40  ;;  %v688_v60 = vshll.u32 %v994_v24, %v685_v40  ;;  %v691_v22 = vshll.u32 %v995_v26, %v685_v40 }
 0x126   :  { %v839_v39 = vadd.s32 4294967294, %v359_v1  ;;  %v694_v16 = vshll.u32 %v996_v32, %v685_v40  ;;  %v697_v29 = vshll.u32 %v997_v33, %v685_v40  ;;  %v700_v2 = vshll.u32 %v998_v35, %v685_v40 }
 0x127   :  { %v471_v50 = vsub.s32 0, %v1248_v19  ;;  %v689_v7 = vshrl.u32 %v995_v26, %v686_v48  ;;  %v692_v41 = vshrl.u32 %v996_v32, %v686_v48  ;;  %v687_v21 = vshrl.u32 %v994_v24, %v686_v48 }
 0x128   :  { %vm840_vm5 = vcmp.lt.s32.totalorder %v839_v39, 0  ;;  %v698_v56 = vshrl.u32 %v998_v35, %v686_v48  ;;  %v701_v3 = vshrl.u32 %v999_v45, %v686_v48  ;;  %vm703_vm9 = vcmp.lt.s32.totalorder %v684_v43, 1  ;;  %v923_v35 = vpop.eup %922 }
 0x129   :  { %v362_v23 = vsel %vm840_vm5, 0, %v839_v39  ;;  %v842_v31 = vmin.u32 %v471_v50, %v1248_v19  ;;  %v690_v6 = vor.u32 %v689_v7, %v688_v60  ;;  %v693_v9 = vor.u32 %v692_v41, %v691_v22 }
 0x12a   :  { %v363_v55 = vsub.s32 32, %v362_v23  ;;  %v364_v57 = vshll.u32 %v355_v28, %v362_v23  ;;  %v367_v58 = vsub.s32 4294967266, %v362_v23  ;;  %v695_v28 = vshrl.u32 %v997_v33, %v686_v48 }
 0x12b   :  { %v473_v10 = vclz %v842_v31  ;;  %v699_v25 = vor.u32 %v698_v56, %v697_v29  ;;  %v702_v1 = vor.u32 %v701_v3, %v700_v2  ;;  %vm705_vm10 = vcmp.lt.s32.totalorder %v684_v43, 3 }
 0x12c   :  { %v365_v61 = vshrl.u32 %v347_v44, %v363_v55  ;;  %v368_v62 = vadd.s32 127, %v367_v58  ;;  %v696_v42 = vor.u32 %v695_v28, %v694_v16  ;;  %v719_v33 = vshll.u32 %v679_v11, 8 }
 0x12d   :  { %v843_v46 = vadd.s32 4294967294, %v473_v10  ;;  %vm704_vm11 = vcmp.lt.s32.totalorder %v684_v43, 2  ;;  %vm706_vm12 = vcmp.lt.s32.totalorder %v684_v43, 4  ;;  %v711_v37 = vsel %vm703_vm9, %v690_v6, %v693_v9 }
 0x12e   :  { %v366_v15 = vor.u32 %v365_v61, %v364_v57  ;;  %v369_v17 = vshll.u32 %v368_v62, 23  ;;  %v708_v45 = vsel %vm706_vm12, %v696_v42, 2102212464  ;;  %v712_v40 = vsel %vm706_vm12, %v699_v25, 920167782 }
 0x12f   :  { %vm844_vm8 = vcmp.lt.s32.totalorder %v843_v46, 0  ;;  %v707_v18 = vsel %vm703_vm9, %v687_v21, %v690_v6  ;;  %v713_v48 = vsel %vm705_vm10, %v696_v42, %v712_v40  ;;  %v709_v50 = vsel %vm705_vm10, %v693_v9, %v708_v45 }
 0x130   :  { %v370_v13 = vor.u32 4788187, %v369_v17  ;;  %v373_v26 = vcvt.s32.f32 %v366_v15  ;;  %v476_v32 = vsel %vm844_vm8, 0, %v843_v46  ;;  %v714_v54 = vsel %vm704_vm11, %v711_v37, %v713_v48 }
 0x131   :  { %v477_v24 = vsub.s32 32, %v476_v32  ;;  %v478_v34 = vshll.u32 %v1248_v19, %v476_v32  ;;  %v481_v36 = vsub.s32 4294967266, %v476_v32  ;;  %v715_v55 = vsel %vm703_vm9, %v693_v9, %v696_v42 }
 0x132   :  { %v371_v8 = vand.u32 2147483647, %v370_v13  ;;  %v716_v31 = vsel %vm706_vm12, %v702_v1, 1326507024  ;;  %v1298_v61 = vmul.u32.u64.low %v719_v33, %v714_v54  ;;  %v1299_v62 = vmul.u32.u64.high %v719_v33, %v714_v54, %v1298_v61 }
 0x133   :  { %v479_v20 = vshrl.u32 %v461_v30, %v477_v24  ;;  %v482_v38 = vadd.s32 127, %v481_v36  ;;  %v717_v60 = vsel %vm705_vm10, %v699_v25, %v716_v31  ;;  %v710_v10 = vsel %vm704_vm11, %v707_v18, %v709_v50 }
 0x134   :  { %v374_v0 = vmul.f32 %v373_v26, %v371_v8  ;;  %v718_v11 = vsel %vm704_vm11, %v715_v55, %v717_v60  ;;  %v380_v22 = vsel %vm1271_vm7, 0, %v1264_v63  ;;  %v1312_v16 = vmul.f32 %v1256_v59, %v1133_v4 }
 0x135   :  { %v480_v44 = vor.u32 %v479_v20, %v478_v34  ;;  %v483_v19 = vshll.u32 %v482_v38, 23  ;;  %v1307_v41 = vmul.u32.u64.low %v719_v33, %v718_v11  ;;  %v1308_v15 = vmul.u32.u64.high %v719_v33, %v718_v11, %v1307_v41 }
 0x136   :  { %v375_v39 = vxor.u32 2147483648, %v374_v0  ;;  %v491_v46 = vsub.s32 4, %v1242_v12  ;;  %v726_v21 = vmul.u32 %v719_v33, %v710_v10  ;;  %v729_v43 = vadd.s32 1, %v1299_v62 }
 0x137   :  { %v484_v58 = vor.u32 4788187, %v483_v19  ;;  %v487_v30 = vcvt.s32.f32 %v480_v44  ;;  %v384_v6 = vadd.s32 3, %v380_v22  ;;  %v283_v9 = vmul.f32 %v923_v35, %v1083_v14 }
 0x138   :  { %v376_v23 = vsel %vm293_vm6, %v375_v39, %v374_v0  ;;  %vm728_vm0 = vc.u32 %v1308_v15, %v1298_v61  ;;  %v658_v13 = vadd.f32 6.1035156e+09, %v1312_v16  ;;  %v492_v28 = vsel %vm407_vm13, %v491_v46, %v1242_v12 }
 0x139   :  { %v379_v57 = vsel %vm1271_vm7, %v1138_v52, %v376_v23  ;;  %v485_v7 = vand.u32 2147483647, %v484_v58  ;;  %v730_v26 = vsel %vm728_vm0, %v729_v43, %v1299_v62  ;;  %v287_v56 = vand.u32 2147483648, %v1083_v14 }
 0x13a   :  { %924 = vcosq.f32 %v379_v57  ;;  %v731_v29 = vadd.s32 %v730_v26, %v726_v21  ;;  %v385_v2 = vand.u32 3, %v384_v6  ;;  %v285_v3 = vsel %vm284_vm1, %v1083_v14, %v283_v9 }
 0x13b   :  { %926 = vsinq.f32 %v379_v57  ;;  %v488_v17 = vmul.f32 %v487_v30, %v485_v7  ;;  %v494_v32 = vsel %vm1319_vm14, 0, %v492_v28  ;;  %v288_v24 = vsel %vm286_vm3, %v287_v56, %v285_v3 }
 0x13c   :  { %v732_v8 = vadd.s32 536870912, %v731_v29  ;;  %vm390_vm15 = vcmp.eq.s32.totalorder %v385_v2, 2  ;;  %vm387_vm2 = vcmp.eq.s32.totalorder %v385_v2, 0  ;;  %v601_v25 = vadd.s32 3, %v494_v32 }
 0x13d   :  { %v489_v5 = vxor.u32 2147483648, %v488_v17  ;;  %vm386_vm4 = vcmp.lt.s32.totalorder %v385_v2, 2  ;;  %v289_v14 = vmul.f32 2.0, %v288_v24  ;;  %vm383_vm5 = vweird.f32 %v1138_v52 }
 0x13e   :  { %v1338_v12 = vshrl.u32 %v732_v8, 30  ;;  %v498_v39 = vand.u32 3, %v494_v32  ;;  %v602_v45 = vand.u32 3, %v601_v25  ;;  %vm497_vm12 = vweird.f32 %v1136_v49 }
 0x13f   :  { %v490_v59 = vsel %vm407_vm13, %v489_v5, %v488_v17  ;;  %v727_v60 = vadd.s32 %v1298_v61, %v1308_v15  ;;  %vm1355_vm0 = vcmp.le.f32.partialorder %v671_v27, 0.7853982 }
 0x140   :  { %v493_v53 = vsel %vm1319_vm14, %v1136_v49, %v490_v59  ;;  %v734_v0 = vshll.u32 %v1338_v12, 30  ;;  %vm503_vm6 = vcmp.eq.s32.totalorder %v498_v39, 2  ;;  %vm607_vm7 = vcmp.eq.s32.totalorder %v602_v45, 2 }
 0x141   :  { %928 = vcosq.f32 %v493_v53  ;;  %vm500_vm8 = vcmp.eq.s32.totalorder %v498_v39, 0  ;;  %vm604_vm9 = vcmp.eq.s32.totalorder %v602_v45, 0  ;;  %vm499_vm10 = vcmp.lt.s32.totalorder %v498_v39, 2 }
 0x142   :  { %930 = vsinq.f32 %v493_v53  ;;  %v735_v20 = vsub.s32 %v731_v29, %v734_v0  ;;  %vm603_vm11 = vcmp.lt.s32.totalorder %v602_v45, 2  ;;  %vm673_vm14 = vcmp.lt.s32.totalorder %v1225_v51, 0 }
 0x143   :  { %932 = vrcp.f32 %v658_v13 }
 0x144   :  { %v737_v37 = vsub.s32 0, %v735_v20 }
 0x146   :  { %v854_v19 = vmin.u32 %v737_v37, %v735_v20 }
 0x147   :  { %v925_v42 = vpop.eup %924 }
 0x148   :  { %v927_v34 = vpop.eup %926  ;;  %v391_v36 = vxor.u32 2147483648, %v925_v42  ;;  %v739_v48 = vclz %v854_v19 }
 0x149   :  { %v388_v1 = vxor.u32 2147483648, %v927_v34 }
 0x14a   :  { %v392_v33 = vsel %vm390_vm15, %v391_v36, %v927_v34  ;;  %v855_v55 = vadd.s32 4294967294, %v739_v48 }
 0x14b   :  { %v389_v38 = vsel %vm387_vm2, %v925_v42, %v388_v1 }
 0x14c   :  { %v393_v35 = vsel %vm386_vm4, %v389_v38, %v392_v33  ;;  %vm856_vm13 = vcmp.lt.s32.totalorder %v855_v55, 0 }
 0x14d   :  { %v394_v40 = vsel %vm383_vm5, nan, %v393_v35  ;;  %v742_v11 = vsel %vm856_vm13, 0, %v855_v55  ;;  %vm763_vm5 = vweird.f32 %v1225_v51 }
 0x14e   :  { %v1342_v44 = vmul.f32 %v394_v40, %v289_v14  ;;  %v929_v18 = vpop.eup %928  ;;  %v743_v17 = vsub.s32 32, %v742_v11  ;;  %v744_v46 = vshll.u32 %v735_v20, %v742_v11  ;;  %v747_v59 = vsub.s32 4294967266, %v742_v11 }
 0x14f   :  { %v931_v23 = vpop.eup %930  ;;  %v504_v50 = vxor.u32 2147483648, %v929_v18 }
 0x150   :  { %v933_v52 = vpop.eup %932  ;;  %v501_v54 = vxor.u32 2147483648, %v931_v23  ;;  %v745_v9 = vshrl.u32 %v727_v60, %v743_v17  ;;  %v748_v53 = vadd.s32 127, %v747_v59 }
 0x151   :  { %v505_v57 = vsel %vm503_vm6, %v504_v50, %v931_v23  ;;  %v609_v58 = vsel %vm607_vm7, %v504_v50, %v931_v23  ;;  %v1348_v10 = vmul.f32 %v933_v52, %v1312_v16  ;;  %v757_v23 = vsub.s32 4, %v1338_v12 }
 0x152   :  { %v502_v30 = vsel %vm500_vm8, %v929_v18, %v501_v54  ;;  %v606_v31 = vsel %vm604_vm9, %v929_v18, %v501_v54  ;;  %v746_v16 = vor.u32 %v745_v9, %v744_v46  ;;  %v749_v32 = vshll.u32 %v748_v53, 23 }
 0x153   :  { %v506_v62 = vsel %vm499_vm10, %v502_v30, %v505_v57  ;;  %v610_v7 = vsel %vm603_vm11, %v606_v31, %v609_v58  ;;  %934 = vrsqrt.f32 %v1348_v10  ;;  %v758_v31 = vsel %vm673_vm14, %v757_v23, %v1338_v12 }
 0x154   :  { %v507_v22 = vsel %vm497_vm12, nan, %v506_v62  ;;  %v611_v41 = vsel %vm497_vm12, nan, %v610_v7  ;;  %v750_v1 = vor.u32 4788187, %v749_v32  ;;  %v753_v14 = vcvt.s32.f32 %v746_v16 }
 0x155   :  { %v612_v21 = vmul.f32 2.0, %v507_v22  ;;  %v615_v49 = vmul.f32 2.0, %v611_v41  ;;  %v617_v43 = vmul.f32 4.0, %v507_v22  ;;  %v621_v6 = vmul.f32 4.0, %v611_v41 }
 0x156   :  { %v630_v63 = vmul.f32 0.8660254, %v507_v22  ;;  %v631_v5 = vmul.f32 0.5, %v611_v41  ;;  %v751_v35 = vand.u32 2147483647, %v750_v1  ;;  %v760_v11 = vsel %vm1355_vm0, 0, %v758_v31 }
 0x157   :  { %v613_v61 = vmul.f32 %v612_v21, %v507_v22  ;;  %v616_v15 = vmul.f32 %v615_v49, %v507_v22  ;;  %v618_v13 = vmul.f32 %v617_v43, %v507_v22  ;;  %v622_v26 = vmul.f32 %v621_v6, %v611_v41 }
 0x158   :  { %v632_v28 = vadd.f32 %v631_v5, %v630_v63  ;;  %v754_v19 = vmul.f32 %v753_v14, %v751_v35  ;;  %v783_v62 = vmul.f32 0.015, %v1133_v4  ;;  %vm663_vm1 = vcmp.eq.f32.partialorder %v1348_v10, inf }
 0x159   :  { %v849_v29 = vadd.f32 -1.0, %v613_v61  ;;  %v850_v56 = vadd.f32 -3.0, %v618_v13  ;;  %v623_v2 = vsub.f32 3.0, %v622_v26  ;;  %v628_v3 = vmul.f32 2.0, %v616_v15 }
 0x15a   :  { %v633_v8 = vmul.f32 0.17, %v632_v28  ;;  %v755_v52 = vxor.u32 2147483648, %v754_v19  ;;  %v764_v12 = vadd.s32 3, %v760_v11  ;;  %vm665_vm3 = vcmp.eq.f32.partialorder %v1348_v10, 0.0 }
 0x15b   :  { %v620_v42 = vmul.f32 %v850_v56, %v507_v22  ;;  %v624_v24 = vmul.f32 %v623_v2, %v611_v41  ;;  %v625_v34 = vmul.f32 2.0, %v849_v29  ;;  %v629_v36 = vmul.f32 %v849_v29, %v628_v3 }
 0x15c   :  { %v634_v25 = vsub.f32 1.0, %v633_v8  ;;  %v635_v0 = vmul.f32 0.24, %v849_v29  ;;  %v756_v57 = vsel %vm673_vm14, %v755_v52, %v754_v19  ;;  %v666_v41 = vand.u32 2147483648, %v1348_v10 }
 0x15d   :  { %v626_v33 = vmul.f32 %v849_v29, %v625_v34  ;;  %v637_v20 = vmul.f32 0.9945219, %v620_v42  ;;  %v638_v38 = vmul.f32 0.104528464, %v624_v24  ;;  %v643_v40 = vmul.f32 0.8910065, %v629_v36 }
 0x15e   :  { %v636_v45 = vadd.f32 %v635_v0, %v634_v25  ;;  %v759_v60 = vsel %vm1355_vm0, %v1225_v51, %v756_v57  ;;  %v765_v21 = vand.u32 3, %v764_v12  ;;  %v791_v2 = vmul.f32 %v1231_v47, %v1231_v47 }
 0x15f   :  { %v851_v39 = vadd.f32 -1.0, %v626_v33  ;;  %v639_v37 = vsub.f32 %v637_v20, %v638_v38  ;;  %936 = vcosq.f32 %v759_v60 }
 0x160   :  { %v935_v58 = vpop.eup %934  ;;  %938 = vsinq.f32 %v759_v60  ;;  %vm770_vm15 = vcmp.eq.s32.totalorder %v765_v21, 2  ;;  %vm767_vm2 = vcmp.eq.s32.totalorder %v765_v21, 0  ;;  %vm766_vm4 = vcmp.lt.s32.totalorder %v765_v21, 2 }
 0x161   :  { %v640_v18 = vmul.f32 0.32, %v639_v37  ;;  %v642_v48 = vmul.f32 0.4539905, %v851_v39  ;;  %v662_v27 = vmul.f32 %v935_v58, %v1348_v10 }
 0x163   :  { %v641_v54 = vadd.f32 %v640_v18, %v636_v45  ;;  %v644_v55 = vadd.f32 %v643_v40, %v642_v48  ;;  %v664_v46 = vsel %vm663_vm1, %v1348_v10, %v662_v27 }
 0x164   :  { %v667_v4 = vsel %vm665_vm3, %v666_v41, %v664_v46 }
 0x165   :  { %v645_v30 = vmul.f32 0.2, %v644_v55  ;;  %v668_v49 = vmul.f32 2.0, %v667_v4 }
 0x167   :  { %v646_v7 = vsub.f32 %v641_v54, %v645_v30  ;;  %v669_v9 = vsub.f32 0.0, %v668_v49 }
 0x169   :  { %v784_v22 = vmul.f32 %v783_v62, %v646_v7 }
 0x16b   :  { %v785_v17 = vadd.f32 1.0, %v784_v22 }
 0x16c   :  { %v937_v43 = vpop.eup %936 }
 0x16d   :  { %940 = vrcp.f32 %v785_v17  ;;  %v939_v6 = vpop.eup %938  ;;  %v771_v63 = vxor.u32 2147483648, %v937_v43 }
 0x16e   :  { %v768_v5 = vxor.u32 2147483648, %v939_v6 }
 0x16f   :  { %v772_v59 = vsel %vm770_vm15, %v771_v63, %v939_v6 }
 0x170   :  { %v769_v61 = vsel %vm767_vm2, %v937_v43, %v768_v5 }
 0x171   :  { %v773_v15 = vsel %vm766_vm4, %v769_v61, %v772_v59 }
 0x172   :  { %v774_v13 = vsel %vm763_vm5, nan, %v773_v15 }
 0x173   :  { %v775_v10 = vmul.f32 %v774_v13, %v669_v9 }
 0x175   :  { %v794_v16 = vmul.f32 %v1231_v47, %v775_v10 }
 0x17a   :  { %v941_v26 = vpop.eup %940 }
 0x17b   :  { %v787_v28 = vmul.f32 %v941_v26, %v785_v17 }
 0x17d   :  { %v788_v53 = vsub.f32 2.0, %v787_v28 }
 0x17f   :  { %v789_v29 = vmul.f32 %v941_v26, %v788_v53 }
 0x181   :  { %v790_v56 = vmul.f32 %v789_v29, %v1342_v44 }
 0x183   :  { %v792_v3 = vmul.f32 %v790_v56, %v790_v56  ;;  %v795_v8 = vmul.f32 %v794_v16, %v790_v56 }
 0x185   :  { %v793_v32 = vadd.f32 %v792_v3, %v791_v2 }
 0x187   :  { %v796_v51 = vadd.f32 %v795_v8, %v793_v32 }
 0x189   :  { %942 = vrsqrt.f32 %v796_v51  ;;  %vm799_vm6 = vcmp.eq.f32.partialorder %v796_v51, inf  ;;  %v802_v24 = vand.u32 2147483648, %v796_v51  ;;  %vm801_vm7 = vcmp.eq.f32.partialorder %v796_v51, 0.0 }
 0x196   :  { %v943_v42 = vpop.eup %942 }
 0x197   :  { %v798_v34 = vmul.f32 %v943_v42, %v796_v51 }
 0x199   :  { %v800_v36 = vsel %vm799_vm6, %v796_v51, %v798_v34 }
 0x19a   :  { %v803_v25 = vsel %vm801_vm7, %v802_v24, %v800_v36 }
 0x19b   :  { %817 = vst [vmem:[#allocation5 + $0x8] sm:$0xff] %v803_v25 }
 0x19c   :  { %975 = shalt.err (!%p972_p9)
}
 0x19d   :  { %829 = dma.vmem_to_hbm [thread:$0]  %s824_s13, 256, %s1383_s1, [#allocation4], %s989_s9, %s989_s9, %s990_s10  }
 0x19e   :  { %986 = dma.done.wait [#allocation4], 256  }
 0x19f   :  { %987 = vsyncadd [#allocation4], 4294967040 }
 0x1a0   :  { %833 = vsyncpa [#allocation3], 1 }
 0x1a1   :  { %834 = vsyncpa [#allocation4], 1 }

</bundles_post_ra>
